<compile_context>
chip_gen: v6e
topology: v6e:2x2x1
jax: 0.10.0
libtpu: 0.0.40
codegen_flags: <defaults>
</compile_context>

<pallas_src>
import functools

import jax
import jax.numpy as jnp
from jax.experimental import pallas as pl
from jax.experimental.pallas import tpu as pltpu


# =============================================================================
# Fused conv-block Pallas kernel
#   [pre-PReLU] -> conv1 (kh x kw, zero pad) + bias [-> PReLU]
#   [-> conv2 3x3 + bias] [-> channel attention] [-> (1x1 shortcut) + residual]
# Grid is over batch; one whole image per grid step, everything VMEM-resident.
# =============================================================================

def _pad_hw(v, pt, pb, p_l, p_r):
    """Zero-pad a (H, W, C) value in-register (concat; no HBM round trip)."""
    h, w, c = v.shape
    if p_l or p_r:
        parts = []
        if p_l:
            parts.append(jnp.zeros((h, p_l, c), v.dtype))
        parts.append(v)
        if p_r:
            parts.append(jnp.zeros((h, p_r, c), v.dtype))
        v = jnp.concatenate(parts, axis=1)
    if pt or pb:
        w2 = v.shape[1]
        parts = []
        if pt:
            parts.append(jnp.zeros((pt, w2, c), v.dtype))
        parts.append(v)
        if pb:
            parts.append(jnp.zeros((pb, w2, c), v.dtype))
        v = jnp.concatenate(parts, axis=0)
    return v


def _im2col_matmul(xp, w_ref, b_ref, kh, kw, hout, wout):
    """Single K-fused MXU matmul: patch (HW, kh*kw*C) @ w (kh*kw*C, Cout)."""
    taps = [xp[i:i + hout, j:j + wout, :] for i in range(kh) for j in range(kw)]
    patch = jnp.concatenate(taps, axis=-1).reshape(hout * wout, -1)
    return jnp.dot(patch, w_ref[...], preferred_element_type=jnp.float32) + b_ref[...]


def _fused_block_kernel(*refs, kh, kw, pt, pb, p_l, p_r, pre_a, act1_a,
                        has_conv2, has_ca, residual, has_shortcut):
    it = iter(refs)
    x_ref = next(it)
    w1_ref = next(it)
    b1_ref = next(it)
    if has_conv2:
        w2_ref = next(it)
        b2_ref = next(it)
    if has_ca:
        cw1_ref = next(it)
        cb1_ref = next(it)
        cw2_ref = next(it)
        cb2_ref = next(it)
    if has_shortcut:
        ws_ref = next(it)
        bs_ref = next(it)
    o_ref = next(it)

    x = x_ref[0]                                    # (Hin, Win, Cin)
    hin, win, cin = x.shape
    hout, wout = o_ref.shape[1], o_ref.shape[2]
    c1 = w1_ref.shape[1]

    # leading PReLU (identity when pre_a is None); prelu(0) == 0 so the zero
    # padding added below is unaffected.
    xa = x if pre_a is None else jnp.where(x >= 0, x, pre_a * x)

    xp = _pad_hw(xa, pt, pb, p_l, p_r)
    y = _im2col_matmul(xp, w1_ref, b1_ref, kh, kw, hout, wout)   # (HW, C1)
    if act1_a is not None:
        y = jnp.where(y >= 0, y, act1_a * y)

    if has_conv2:
        yp = _pad_hw(y.reshape(hout, wout, c1), 1, 1, 1, 1)
        y = _im2col_matmul(yp, w2_ref, b2_ref, 3, 3, hout, wout)

    if has_ca:
        m = jnp.mean(y, axis=0, keepdims=True)                   # (1, C1)
        hid = jnp.dot(m, cw1_ref[...],
                      preferred_element_type=jnp.float32) + cb1_ref[...]
        hid = jnp.maximum(hid, 0.0)
        z = jnp.dot(hid, cw2_ref[...],
                    preferred_element_type=jnp.float32) + cb2_ref[...]
        y = y * (1.0 / (1.0 + jnp.exp(-z)))

    if residual:
        if has_shortcut:
            sc = jnp.dot(x.reshape(hin * win, cin), ws_ref[...],
                         preferred_element_type=jnp.float32) + bs_ref[...]
        else:
            sc = x.reshape(hin * win, cin)
        y = y + sc

    o_ref[0] = y.reshape(hout, wout, y.shape[-1])


# ---- stride-2 conv == stride-1 2x2 conv over space-to-depth input ----------

def _space_to_depth(x):
    """(N, H, W, C) -> (N, H/2, W/2, 4C) with depth order (p, q, c)."""
    n, h, w, c = x.shape
    x = x.reshape(n, h // 2, 2, w // 2, 2, c)
    x = jnp.transpose(x, (0, 1, 3, 2, 4, 5))
    return x.reshape(n, h // 2, w // 2, 4 * c)


_S2D_TAP = {(0, 1): 0, (1, 0): 1, (1, 1): 2}


def _s2d_weights(w):
    """Rewrite a 3x3 stride-2 'same' conv weight as a 2x2 stride-1 conv over
    the space-to-depth input: (3,3,Cin,Cout) -> (2,2,4*Cin,Cout)."""
    kh, kw, cin, cout = w.shape
    assert kh == 3 and kw == 3
    zero = jnp.zeros((cin, cout), w.dtype)

    def tap(a, p, b, q):
        di = _S2D_TAP.get((a, p))
        dj = _S2D_TAP.get((b, q))
        if di is None or dj is None:
            return zero
        return w[di, dj]

    rows = []
    for a in range(2):
        cols = []
        for b in range(2):
            depth = jnp.concatenate(
                [tap(a, p, b, q) for p in range(2) for q in range(2)], axis=0)
            cols.append(depth)
        rows.append(jnp.stack(cols, axis=0))
    return jnp.stack(rows, axis=0)                   # (2, 2, 4*Cin, Cout)


def fused_block(x, *, w1, b1, stride=1, pre_a=None, act1_a=None,
                conv2=None, ca=None, residual=False, shortcut=None):
    """One pallas_call for an entire conv block / ResBlock.  NHWC in/out."""
    x = x.astype(jnp.float32)
    if stride == 2:
        _, h0, w0, _ = x.shape
        assert h0 % 2 == 0 and w0 % 2 == 0
        x = _space_to_depth(x)
        w1 = _s2d_weights(w1)
        pt, pb, p_l, p_r = 1, 0, 1, 0       # pad top/left only for the 2x2 conv
    else:
        assert stride == 1
        pad = (w1.shape[0] - 1) // 2
        pt = pb = p_l = p_r = pad

    n, hin, win, cin = x.shape
    kh, kw, _, c1 = w1.shape
    hout = hin + pt + pb - kh + 1
    wout = win + p_l + p_r - kw + 1

    def _full(a):
        return pl.BlockSpec(a.shape, lambda i, _nd=a.ndim: (0,) * _nd)

    inputs = [x, w1.reshape(kh * kw * cin, c1), b1.reshape(1, c1)]
    in_specs = [pl.BlockSpec((1, hin, win, cin), lambda i: (i, 0, 0, 0)),
                _full(inputs[1]), _full(inputs[2])]
    if conv2 is not None:
        w2, b2 = conv2
        inputs += [w2.reshape(9 * c1, c1), b2.reshape(1, c1)]
        in_specs += [_full(inputs[-2]), _full(inputs[-1])]
    if ca is not None:
        cw1, cb1, cw2, cb2 = ca
        cr = cw1.shape[-1]
        inputs += [cw1, cb1.reshape(1, cr), cw2, cb2.reshape(1, c1)]
        in_specs += [_full(a) for a in inputs[-4:]]
    if shortcut is not None:
        ws, bs = shortcut
        inputs += [ws.reshape(cin, c1), bs.reshape(1, c1)]
        in_specs += [_full(inputs[-2]), _full(inputs[-1])]

    kernel = functools.partial(
        _fused_block_kernel, kh=kh, kw=kw, pt=pt, pb=pb, p_l=p_l, p_r=p_r,
        pre_a=None if pre_a is None else float(pre_a),
        act1_a=None if act1_a is None else float(act1_a),
        has_conv2=conv2 is not None, has_ca=ca is not None,
        residual=bool(residual), has_shortcut=shortcut is not None)

    return pl.pallas_call(
        kernel,
        out_shape=jax.ShapeDtypeStruct((n, hout, wout, c1), jnp.float32),
        grid=(n,),
        in_specs=in_specs,
        out_specs=pl.BlockSpec((1, hout, wout, c1), lambda i: (i, 0, 0, 0)),
        compiler_params=pltpu.CompilerParams(
            dimension_semantics=("parallel",),
            vmem_limit_bytes=64 * 1024 * 1024),
    )(*inputs)


# =============================================================================
# Sobel / metric kernels (lane-dense: W on the 128-lane axis)
# =============================================================================

_SOBEL_X = ((-1.0, 0.0, 1.0), (-2.0, 0.0, 2.0), (-1.0, 0.0, 1.0))


def _sobel_kernel(x_ref, o_ref):
    """kornia.filters.sobel: normalized grads + magnitude (replicate pad)."""
    x = x_ref[0]                                      # (C, H+2, W+2)
    h, w = o_ref.shape[2], o_ref.shape[3]
    gx = jnp.zeros((x.shape[0], h, w), jnp.float32)
    gy = jnp.zeros_like(gx)
    for i in range(3):
        for j in range(3):
            wx = _SOBEL_X[i][j] / 8.0
            wy = _SOBEL_X[j][i] / 8.0
            if wx == 0.0 and wy == 0.0:
                continue
            p = x[:, i:i + h, j:j + w]
            if wx != 0.0:
                gx = gx + wx * p
            if wy != 0.0:
                gy = gy + wy * p
    o_ref[0] = jnp.sqrt(gx * gx + gy * gy + 1e-6)


def sobel_nchw(x_nchw):
    """Sobel on NCHW input (W lane-dense); returns NHWC for downstream use."""
    n, c, h, w = x_nchw.shape
    # tiny 3-channel tensor, 2 calls per forward: host-side replicate pad is fine.
    xp = jnp.pad(x_nchw, ((0, 0), (0, 0), (1, 1), (1, 1)), mode='edge')
    out = pl.pallas_call(
        _sobel_kernel,
        out_shape=jax.ShapeDtypeStruct((n, c, h, w), jnp.float32),
        grid=(n,),
        in_specs=[pl.BlockSpec((1, c, h + 2, w + 2), lambda i: (i, 0, 0, 0))],
        out_specs=pl.BlockSpec((1, c, h, w), lambda i: (i, 0, 0, 0)),
        compiler_params=pltpu.CompilerParams(dimension_semantics=("parallel",)),
    )(xp)
    return jnp.transpose(out, (0, 2, 3, 1))


def _metric_kernel(a_ref, b_ref, o_ref, *, alpha):
    """alpha * mean_over_channels(|a - b|); channel-major so W is lane-dense."""
    d = jnp.abs(a_ref[0] - b_ref[0])                  # (C, H, W)
    o_ref[0] = alpha * jnp.mean(d, axis=0)            # (H, W)


def metric_fn(alpha, ten_first, ten_second, flow):
    warped = backwarp(ten_second, flow)
    a = jnp.transpose(ten_first, (0, 3, 1, 2))
    b = jnp.transpose(warped, (0, 3, 1, 2))
    n, c, h, w = a.shape
    out = pl.pallas_call(
        functools.partial(_metric_kernel, alpha=float(alpha)),
        out_shape=jax.ShapeDtypeStruct((n, h, w), jnp.float32),
        grid=(n,),
        in_specs=[pl.BlockSpec((1, c, h, w), lambda i: (i, 0, 0, 0)),
                  pl.BlockSpec((1, c, h, w), lambda i: (i, 0, 0, 0))],
        out_specs=pl.BlockSpec((1, h, w), lambda i: (i, 0, 0)),
        compiler_params=pltpu.CompilerParams(dimension_semantics=("parallel",)),
    )(a, b)
    return out[..., None]                              # (N, H, W, 1)


# =============================================================================
# JAX glue: bilinear resize, grid-sample backwarp, softmax splatting
# (data-dependent gather/scatter -- no clean Pallas TPU equivalent, kept in JAX)
# =============================================================================

def _src_index(out_size, in_size):
    i = jnp.arange(out_size, dtype=jnp.float32)
    s = (i + 0.5) * (in_size / out_size) - 0.5        # align_corners=False
    s = jnp.maximum(s, 0.0)
    i0 = jnp.minimum(jnp.floor(s).astype(jnp.int32), in_size - 1)
    i1 = jnp.minimum(i0 + 1, in_size - 1)
    return i0, i1, s - i0.astype(jnp.float32)


def resize_bilinear(x, out_h, out_w):
    """F.interpolate(..., mode='bilinear', align_corners=False) on NHWC."""
    _, h, w, _ = x.shape
    if h == out_h and w == out_w:
        return x
    y0, y1, fy = _src_index(out_h, h)
    x0, x1, fx = _src_index(out_w, w)
    r0 = x[:, y0, :, :]
    r1 = x[:, y1, :, :]
    xv = r0 * (1.0 - fy)[None, :, None, None] + r1 * fy[None, :, None, None]
    c0 = xv[:, :, x0, :]
    c1 = xv[:, :, x1, :]
    return c0 * (1.0 - fx)[None, None, :, None] + c1 * fx[None, None, :, None]


def _grid_sample_zeros(img, px, py):
    h, w, _ = img.shape
    x0 = jnp.floor(px)
    y0 = jnp.floor(py)

    def gather(xi, yi):
        valid = (xi >= 0) & (xi <= w - 1) & (yi >= 0) & (yi <= h - 1)
        xc = jnp.clip(xi, 0, w - 1).astype(jnp.int32)
        yc = jnp.clip(yi, 0, h - 1).astype(jnp.int32)
        return img[yc, xc] * valid[..., None]

    wx1 = px - x0
    wy1 = py - y0
    return (gather(x0, y0) * ((1 - wx1) * (1 - wy1))[..., None]
            + gather(x0 + 1, y0) * (wx1 * (1 - wy1))[..., None]
            + gather(x0, y0 + 1) * ((1 - wx1) * wy1)[..., None]
            + gather(x0 + 1, y0 + 1) * (wx1 * wy1)[..., None])


def backwarp(inp, flow):
    """torch backwarp: grid_sample(bilinear, zeros padding, align_corners=False)."""
    _, h, w, _ = inp.shape
    gx = jnp.broadcast_to(jnp.linspace(-1.0, 1.0, w)[None, :], (h, w))
    gy = jnp.broadcast_to(jnp.linspace(-1.0, 1.0, h)[:, None], (h, w))
    nx = gx[None] + flow[..., 0] / ((w - 1.0) / 2.0)
    ny = gy[None] + flow[..., 1] / ((h - 1.0) / 2.0)
    px = ((nx + 1.0) * w - 1.0) / 2.0
    py = ((ny + 1.0) * h - 1.0) / 2.0
    return jax.vmap(_grid_sample_zeros)(inp, px, py)


def _splat_one(vals, px, py):
    h, w, c = vals.shape
    out = jnp.zeros((h * w, c), jnp.float32)
    x0 = jnp.floor(px)
    y0 = jnp.floor(py)
    for dx, dy in ((0, 0), (1, 0), (0, 1), (1, 1)):
        xi = x0 + dx
        yi = y0 + dy
        wgt = (1.0 - jnp.abs(px - xi)) * (1.0 - jnp.abs(py - yi))
        valid = (xi >= 0) & (xi <= w - 1) & (yi >= 0) & (yi <= h - 1)
        wgt = wgt * valid
        idx = (jnp.clip(yi, 0, h - 1).astype(jnp.int32) * w
               + jnp.clip(xi, 0, w - 1).astype(jnp.int32)).reshape(-1)
        out = out.at[idx].add((vals * wgt[..., None]).reshape(-1, c))
    return out.reshape(h, w, c)


def softsplat_softmax(inp, flow, metric):
    """softsplat.FunctionSoftsplat(strType='softmax') forward, NHWC."""
    _, h, w, _ = inp.shape
    wgt = jnp.exp(metric)
    vals = jnp.concatenate([inp * wgt, wgt], axis=-1)
    gy, gx = jnp.meshgrid(jnp.arange(h, dtype=jnp.float32),
                          jnp.arange(w, dtype=jnp.float32), indexing='ij')
    px = gx[None] + flow[..., 0]
    py = gy[None] + flow[..., 1]
    out = jax.vmap(_splat_one)(vals, px, py)
    norm = out[..., -1:]
    norm = jnp.where(norm == 0.0, 1.0, norm)
    return out[..., :-1] / norm


# =============================================================================
# Deterministic parameter init
# =============================================================================

_KEY = [jax.random.PRNGKey(0)]


def _next_key():
    _KEY[0], k = jax.random.split(_KEY[0])
    return k


def init_conv_params(cin, cout, k=3):
    fan_in = cin * k * k
    w = jax.random.normal(_next_key(), (k, k, cin, cout), jnp.float32) / (fan_in ** 0.5)
    b = 0.01 * jax.random.normal(_next_key(), (cout,), jnp.float32)
    return {'w': w, 'b': b}


def init_resblock(cin, cout, residual=True):
    p = {
        'pre_a': 0.25,                              # PReLU default init
        'c1': init_conv_params(cin, cout), 'a1': 0.25,
        'c2': init_conv_params(cout, cout),
        'residual': residual,
    }
    cr = max(cout // 16, 1)
    p['ca_w1'] = jax.random.normal(_next_key(), (cout, cr), jnp.float32) / (cout ** 0.5)
    p['ca_b1'] = jnp.zeros((1, cr), jnp.float32)
    p['ca_w2'] = jax.random.normal(_next_key(), (cr, cout), jnp.float32) / (cr ** 0.5)
    p['ca_b2'] = jnp.zeros((1, cout), jnp.float32)
    if residual and cin != cout:
        p['shortcut'] = init_conv_params(cin, cout, k=1)
    return p


def init_feature_extractor():
    return {
        'c11': init_conv_params(3, 32), 'a11': 0.25,
        'c12': init_conv_params(32, 32), 'a12': 0.25,
        'c21': init_conv_params(32, 64), 'a21': 0.25,
        'c22': init_conv_params(64, 64), 'a22': 0.25,
        'c31': init_conv_params(64, 96), 'a31': 0.25,
        'c32': init_conv_params(96, 96),
    }


def init_gridnet():
    g = {}
    for suf in ('', '_bw'):
        g['l1_head' + suf] = init_resblock((32 + 9) * 2, 32)
        for i in range(1, 6):
            g['l1_%d%s' % (i, suf)] = init_resblock(32, 32)
        g['l1_out' + suf] = init_resblock(32, 32)
        g['l2_head' + suf] = init_resblock(64 * 2, 64)
        for i in range(1, 6):
            g['l2_%d%s' % (i, suf)] = init_resblock(64, 64)
        g['l3_head' + suf] = init_resblock(96 * 2, 96)
        for i in range(1, 6):
            g['l3_%d%s' % (i, suf)] = init_resblock(96, 96)
        for i in range(3):
            g['d1_%d%s' % (i, suf)] = init_resblock(32, 64, residual=False)
            g['d2_%d%s' % (i, suf)] = init_resblock(64, 96, residual=False)
        for i in range(3, 6):
            g['u1_%d%s' % (i, suf)] = init_resblock(64, 32, residual=False)
            g['u2_%d%s' % (i, suf)] = init_resblock(96, 64, residual=False)
    g['out'] = init_conv_params(64, 3, 3)
    return g


def init_hwfi_params():
    return {'fe': init_feature_extractor(),
            'grid': init_gridnet(),
            'metric_alpha': -1.0}


# =============================================================================
# Module forwards (compose the fused Pallas blocks)
# =============================================================================

def resblock(p, x, stride=1, upsample_to=None):
    if isinstance(x, (list, tuple)):
        x = jnp.concatenate(x, axis=-1)
    if upsample_to is not None:
        x = resize_bilinear(x, upsample_to.shape[1], upsample_to.shape[2])
    shortcut = None
    if p['residual'] and 'shortcut' in p:
        shortcut = (p['shortcut']['w'], p['shortcut']['b'])
    return fused_block(
        x, w1=p['c1']['w'], b1=p['c1']['b'], stride=stride,
        pre_a=p['pre_a'], act1_a=p['a1'],
        conv2=(p['c2']['w'], p['c2']['b']),
        ca=(p['ca_w1'], p['ca_b1'], p['ca_w2'], p['ca_b2']),
        residual=p['residual'], shortcut=shortcut)


def feature_extractor(p, x):
    s1 = fused_block(x, w1=p['c11']['w'], b1=p['c11']['b'],
                     act1_a=p['a11'], conv2=(p['c12']['w'], p['c12']['b']))
    s2 = fused_block(s1, w1=p['c21']['w'], b1=p['c21']['b'], stride=2,
                     pre_a=p['a12'], act1_a=p['a21'],
                     conv2=(p['c22']['w'], p['c22']['b']))
    s3 = fused_block(s2, w1=p['c31']['w'], b1=p['c31']['b'], stride=2,
                     pre_a=p['a22'], act1_a=p['a31'],
                     conv2=(p['c32']['w'], p['c32']['b']))
    return {'s1': s1, 's2': s2, 's3': s3}


def gridnet(g, f1, f2, e1, e2, im1, im2, f1d, f2d,
            f1b, f2b, e1b, e2b, f1db, f2db):
    def RB(name, x, **kw):
        return resblock(g[name], x, **kw)

    x10 = RB('l1_head', [f1, f2, e1, e2, im1, im2, f1d['s1'], f2d['s1']])
    x11 = RB('l1_1', x10)
    x12 = RB('l1_2', x11)
    x20 = RB('l2_head', [f1d['s2'], f2d['s2']]) + RB('d1_0', x10, stride=2)
    x21 = RB('l2_1', x20) + RB('d1_1', x11, stride=2)
    x22 = RB('l2_2', x21) + RB('d1_2', x12, stride=2)
    x30 = RB('l3_head', [f1d['s3'], f2d['s3']]) + RB('d2_0', x20, stride=2)
    x31 = RB('l3_1', x30) + RB('d2_1', x21, stride=2)
    x32 = RB('l3_2', x31) + RB('d2_2', x22, stride=2)

    x10b = RB('l1_head_bw', [f1b, f2b, e1b, e2b, im1, im2, f1db['s1'], f2db['s1']])
    x11b = RB('l1_1_bw', x10b)
    x12b = RB('l1_2_bw', x11b)
    x20b = RB('l2_head_bw', [f1db['s2'], f2db['s2']]) + RB('d1_0_bw', x10b, stride=2)
    x21b = RB('l2_1_bw', x20b) + RB('d1_1_bw', x11b, stride=2)
    x22b = RB('l2_2_bw', x21b) + RB('d1_2_bw', x12b, stride=2)
    x30b = RB('l3_head_bw', [f1db['s3'], f2db['s3']]) + RB('d2_0_bw', x20b, stride=2)
    x31b = RB('l3_1_bw', x30b) + RB('d2_1_bw', x21b, stride=2)
    x32b = RB('l3_2_bw', x31b) + RB('d2_2_bw', x22b, stride=2)

    # sequential update semantics exactly as in the PyTorch code
    x30 = x30 + x30b
    x31 = x31 + x31b
    x32 = x32 + x32b
    x30b = x30 + x30b
    x31b = x31 + x31b
    x32b = x32 + x32b

    x33 = RB('l3_3', x32)
    x33b = RB('l3_3_bw', x32b)
    x34 = RB('l3_4', x33)
    x34b = RB('l3_4_bw', x33b)
    x35 = RB('l3_5', x34)
    x35b = RB('l3_5_bw', x34b)

    x23 = RB('l2_3', x22) + RB('u2_3', x33, upsample_to=x22)
    x23b = RB('l2_3_bw', x22b) + RB('u2_3_bw', x33b, upsample_to=x22b)
    x24 = RB('l2_4', x23) + RB('u2_4', x34, upsample_to=x23)
    x24b = RB('l2_4_bw', x23b) + RB('u2_4_bw', x34b, upsample_to=x23b)
    x25 = RB('l2_5', x24) + RB('u2_5', x35, upsample_to=x24)
    x25b = RB('l2_5_bw', x24b) + RB('u2_5_bw', x35b, upsample_to=x24b)

    x13 = RB('l1_3', x12) + RB('u1_3', x23, upsample_to=x12)
    x13b = RB('l1_3_bw', x12b) + RB('u1_3_bw', x23b, upsample_to=x12b)
    x14 = RB('l1_4', x13) + RB('u1_4', x24, upsample_to=x13)
    x14b = RB('l1_4_bw', x13b) + RB('u1_4_bw', x24b, upsample_to=x13b)
    x15 = RB('l1_5', x14) + RB('u1_5', x25, upsample_to=x14)
    x15b = RB('l1_5_bw', x14b) + RB('u1_5_bw', x25b, upsample_to=x14b)

    res_fw = RB('l1_out', x15)
    res_bw = RB('l1_out_bw', x15b)
    res = fused_block(jnp.concatenate([res_fw, res_bw], axis=-1),
                      w1=g['out']['w'], b1=g['out']['b'])
    return res


def synthetic_flow(b, h4, w4):
    # TODO(synk): PWCNet (FlowNet._model) is not defined in the reference source
    # and its pretrained checkpoint cannot be loaded; a deterministic synthetic
    # flow field at 1/4 resolution is substituted for the flow-net output.
    yy, xx = jnp.meshgrid(jnp.arange(h4, dtype=jnp.float32),
                          jnp.arange(w4, dtype=jnp.float32), indexing='ij')
    fx = 0.5 * jnp.sin(2.0 * jnp.pi * xx / w4)
    fy = 0.5 * jnp.cos(2.0 * jnp.pi * yy / h4)
    f01 = jnp.broadcast_to(jnp.stack([fx, fy], axis=-1)[None], (b, h4, w4, 2))
    return f01, -f01


def hwfi_forward(params, im0_nchw, im1_nchw, t=0.5):
    im0 = jnp.transpose(im0_nchw, (0, 2, 3, 1)).astype(jnp.float32)
    im1 = jnp.transpose(im1_nchw, (0, 2, 3, 1)).astype(jnp.float32)
    b, h, w, _ = im0.shape

    f01_s3, f10_s3 = synthetic_flow(b, h // 4, w // 4)

    x = jnp.concatenate([im0, im1], axis=0)
    edge0 = sobel_nchw(im0_nchw.astype(jnp.float32))
    edge1 = sobel_nchw(im1_nchw.astype(jnp.float32))

    f_dict = feature_extractor(params['fe'], x)
    f_dict_bw = f_dict  # second extractor call uses identical weights & input

    f0d = {k: v[:b] for k, v in f_dict.items()}
    f1d = {k: v[b:] for k, v in f_dict.items()}
    f0db = {k: v[:b] for k, v in f_dict_bw.items()}
    f1db = {k: v[b:] for k, v in f_dict_bw.items()}

    f01_s2 = resize_bilinear(f01_s3, h // 2, w // 2) * 2.0
    f10_s2 = resize_bilinear(f10_s3, h // 2, w // 2) * 2.0
    f01_s1 = resize_bilinear(f01_s3, h, w) * 4.0
    f10_s1 = resize_bilinear(f10_s3, h, w) * 4.0

    alpha = params['metric_alpha']
    z0_s1 = metric_fn(alpha, im0, im1, f01_s1)
    z1_s1 = metric_fn(alpha, im1, im0, f10_s1)
    z0_s2 = resize_bilinear(z0_s1, h // 2, w // 2)
    z1_s2 = resize_bilinear(z1_s1, h // 2, w // 2)
    z0_s3 = resize_bilinear(z0_s2, h // 4, w // 4)
    z1_s3 = resize_bilinear(z1_s2, h // 4, w // 4)

    f0 = softsplat_softmax(im0, f01_s1 * t, z0_s1)
    f1 = softsplat_softmax(im1, f10_s1 * (1.0 - t), z1_s1)
    f0d = {'s1': softsplat_softmax(f0d['s1'], f01_s1 * t, z0_s1),
           's2': softsplat_softmax(f0d['s2'], f01_s2 * t, z0_s2),
           's3': softsplat_softmax(f0d['s3'], f01_s3 * t, z0_s3)}
    f1d = {'s1': softsplat_softmax(f1d['s1'], f10_s1 * (1.0 - t), z1_s1),
           's2': softsplat_softmax(f1d['s2'], f10_s2 * (1.0 - t), z1_s2),
           's3': softsplat_softmax(f1d['s3'], f10_s3 * (1.0 - t), z1_s3)}
    edge0_fwd = softsplat_softmax(edge0, f01_s1 * t, z0_s1)
    edge1_fwd = softsplat_softmax(edge1, f10_s1 * (1.0 - t), z1_s1)

    f01_s1_bw = -(1 - t) * t * f01_s1 + t * t * f10_s1
    f01_s2_bw = -(1 - t) * t * f01_s2 + t * t * f10_s2
    f01_s3_bw = -(1 - t) * t * f01_s3 + t * t * f10_s3
    f10_s1_bw = (1 - t) * (1 - t) * f01_s1 - (1 - t) * t * f10_s1
    f10_s2_bw = (1 - t) * (1 - t) * f01_s2 - (1 - t) * t * f10_s2
    f10_s3_bw = (1 - t) * (1 - t) * f01_s3 - (1 - t) * t * f10_s3

    f0_bw = backwarp(im0, f01_s1_bw)
    f1_bw = backwarp(im1, f10_s1_bw)
    edge0_bw = backwarp(edge0, f01_s1_bw)
    edge1_bw = backwarp(edge1, f10_s1_bw)
    f0db = {'s1': backwarp(f0db['s1'], f01_s1_bw),
            's2': backwarp(f0db['s2'], f01_s2_bw),
            's3': backwarp(f0db['s3'], f01_s3_bw)}
    f1db = {'s1': backwarp(f1db['s1'], f10_s1_bw),
            's2': backwarp(f1db['s2'], f10_s2_bw),
            's3': backwarp(f1db['s3'], f10_s3_bw)}

    res = gridnet(params['grid'], f0, f1, edge0_fwd, edge1_fwd, im0, im1,
                  f0d, f1d, f0_bw, f1_bw, edge0_bw, edge1_bw, f0db, f1db)
    return jnp.transpose(res, (0, 3, 1, 2))   # back to NCHW


# =============================================================================
if __name__ == "__main__":
    B, C, H, W = 2, 3, 32, 32
    k0, k1 = jax.random.split(jax.random.PRNGKey(0))
    im0 = jax.random.uniform(k0, (B, C, H, W), jnp.float32)
    im1 = jax.random.uniform(k1, (B, C, H, W), jnp.float32)

    params = init_hwfi_params()
    out = hwfi_forward(params, im0, im1, t=0.5)
    out = jax.block_until_ready(out)
    assert out.shape == (B, 3, H, W), out.shape
    assert jnp.all(jnp.isfinite(out))
    print("KERNEL_OK")
</pallas_src>

<mosaic_0001>
module attributes {stable_mosaic.version = 11 : i64} {
  func.func @_sobel_kernel(%arg0: i32, %arg1: memref<1x3x34x34xf32, #tpu.memory_space<vmem>>, %arg2: memref<1x3x32x32xf32, #tpu.memory_space<vmem>>) attributes {dimension_semantics = [#tpu.dimension_semantics<parallel>], iteration_bounds = array<i64: 2>, scalar_prefetch = 0 : i64, scratch_operands = 0 : i64, tpu.core_type = #tpu.core_type<tc>, window_params = [{transform_indices = @transform_0, window_bounds = array<i64: 1, 3, 34, 34>}, {transform_indices = @transform_1, window_bounds = array<i64: 1, 3, 32, 32>}]} {
    %c0 = arith.constant 0 : index
    %c0_0 = arith.constant 0 : index
    %c0_1 = arith.constant 0 : index
    %c0_2 = arith.constant 0 : index
    %0 = vector.load %arg1[%c0, %c0_0, %c0_1, %c0_2] : memref<1x3x34x34xf32, #tpu.memory_space<vmem>>, vector<1x3x34x34xf32>
    %1 = vector.shape_cast %0 : vector<1x3x34x34xf32> to vector<3x34x34xf32>
    %cst = arith.constant 0.000000e+00 : f32
    %2 = vector.broadcast %cst : f32 to vector<3x32x32xf32>
    %cst_3 = arith.constant 0.000000e+00 : f32
    %3 = vector.broadcast %cst_3 : f32 to vector<3x32x32xf32>
    %4 = vector.extract_strided_slice %1 {offsets = [0, 0, 0], sizes = [3, 32, 32], strides = [1, 1, 1]} : vector<3x34x34xf32> to vector<3x32x32xf32>
    %cst_4 = arith.constant -1.250000e-01 : f32
    %5 = vector.broadcast %cst_4 : f32 to vector<3x32x32xf32>
    %6 = arith.mulf %5, %4 : vector<3x32x32xf32>
    %7 = arith.addf %2, %6 : vector<3x32x32xf32>
    %cst_5 = arith.constant -1.250000e-01 : f32
    %8 = vector.broadcast %cst_5 : f32 to vector<3x32x32xf32>
    %9 = arith.mulf %8, %4 : vector<3x32x32xf32>
    %10 = arith.addf %3, %9 : vector<3x32x32xf32>
    %11 = vector.extract_strided_slice %1 {offsets = [0, 0, 1], sizes = [3, 32, 32], strides = [1, 1, 1]} : vector<3x34x34xf32> to vector<3x32x32xf32>
    %cst_6 = arith.constant -2.500000e-01 : f32
    %12 = vector.broadcast %cst_6 : f32 to vector<3x32x32xf32>
    %13 = arith.mulf %12, %11 : vector<3x32x32xf32>
    %14 = arith.addf %10, %13 : vector<3x32x32xf32>
    %15 = vector.extract_strided_slice %1 {offsets = [0, 0, 2], sizes = [3, 32, 32], strides = [1, 1, 1]} : vector<3x34x34xf32> to vector<3x32x32xf32>
    %cst_7 = arith.constant 1.250000e-01 : f32
    %16 = vector.broadcast %cst_7 : f32 to vector<3x32x32xf32>
    %17 = arith.mulf %16, %15 : vector<3x32x32xf32>
    %18 = arith.addf %7, %17 : vector<3x32x32xf32>
    %cst_8 = arith.constant -1.250000e-01 : f32
    %19 = vector.broadcast %cst_8 : f32 to vector<3x32x32xf32>
    %20 = arith.mulf %19, %15 : vector<3x32x32xf32>
    %21 = arith.addf %14, %20 : vector<3x32x32xf32>
    %22 = vector.extract_strided_slice %1 {offsets = [0, 1, 0], sizes = [3, 32, 32], strides = [1, 1, 1]} : vector<3x34x34xf32> to vector<3x32x32xf32>
    %cst_9 = arith.constant -2.500000e-01 : f32
    %23 = vector.broadcast %cst_9 : f32 to vector<3x32x32xf32>
    %24 = arith.mulf %23, %22 : vector<3x32x32xf32>
    %25 = arith.addf %18, %24 : vector<3x32x32xf32>
    %26 = vector.extract_strided_slice %1 {offsets = [0, 1, 2], sizes = [3, 32, 32], strides = [1, 1, 1]} : vector<3x34x34xf32> to vector<3x32x32xf32>
    %cst_10 = arith.constant 2.500000e-01 : f32
    %27 = vector.broadcast %cst_10 : f32 to vector<3x32x32xf32>
    %28 = arith.mulf %27, %26 : vector<3x32x32xf32>
    %29 = arith.addf %25, %28 : vector<3x32x32xf32>
    %30 = vector.extract_strided_slice %1 {offsets = [0, 2, 0], sizes = [3, 32, 32], strides = [1, 1, 1]} : vector<3x34x34xf32> to vector<3x32x32xf32>
    %cst_11 = arith.constant -1.250000e-01 : f32
    %31 = vector.broadcast %cst_11 : f32 to vector<3x32x32xf32>
    %32 = arith.mulf %31, %30 : vector<3x32x32xf32>
    %33 = arith.addf %29, %32 : vector<3x32x32xf32>
    %cst_12 = arith.constant 1.250000e-01 : f32
    %34 = vector.broadcast %cst_12 : f32 to vector<3x32x32xf32>
    %35 = arith.mulf %34, %30 : vector<3x32x32xf32>
    %36 = arith.addf %21, %35 : vector<3x32x32xf32>
    %37 = vector.extract_strided_slice %1 {offsets = [0, 2, 1], sizes = [3, 32, 32], strides = [1, 1, 1]} : vector<3x34x34xf32> to vector<3x32x32xf32>
    %cst_13 = arith.constant 2.500000e-01 : f32
    %38 = vector.broadcast %cst_13 : f32 to vector<3x32x32xf32>
    %39 = arith.mulf %38, %37 : vector<3x32x32xf32>
    %40 = arith.addf %36, %39 : vector<3x32x32xf32>
    %41 = vector.extract_strided_slice %1 {offsets = [0, 2, 2], sizes = [3, 32, 32], strides = [1, 1, 1]} : vector<3x34x34xf32> to vector<3x32x32xf32>
    %cst_14 = arith.constant 1.250000e-01 : f32
    %42 = vector.broadcast %cst_14 : f32 to vector<3x32x32xf32>
    %43 = arith.mulf %42, %41 : vector<3x32x32xf32>
    %44 = arith.addf %33, %43 : vector<3x32x32xf32>
    %cst_15 = arith.constant 1.250000e-01 : f32
    %45 = vector.broadcast %cst_15 : f32 to vector<3x32x32xf32>
    %46 = arith.mulf %45, %41 : vector<3x32x32xf32>
    %47 = arith.addf %40, %46 : vector<3x32x32xf32>
    %48 = arith.mulf %44, %44 : vector<3x32x32xf32>
    %49 = arith.mulf %47, %47 : vector<3x32x32xf32>
    %50 = arith.addf %48, %49 : vector<3x32x32xf32>
    %cst_16 = arith.constant 9.99999997E-7 : f32
    %51 = vector.broadcast %cst_16 : f32 to vector<3x32x32xf32>
    %52 = arith.addf %50, %51 : vector<3x32x32xf32>
    %53 = math.sqrt %52 : vector<3x32x32xf32>
    %c0_17 = arith.constant 0 : index
    %c0_18 = arith.constant 0 : index
    %c0_19 = arith.constant 0 : index
    %c0_20 = arith.constant 0 : index
    %54 = vector.load %arg2[%c0_17, %c0_18, %c0_19, %c0_20] : memref<1x3x32x32xf32, #tpu.memory_space<vmem>>, vector<1x3x32x32xf32>
    %55 = vector.shape_cast %54 : vector<1x3x32x32xf32> to vector<3x32x32xf32>
    %56 = vector.shape_cast %53 : vector<3x32x32xf32> to vector<1x3x32x32xf32>
    tpu.vector_store %arg2[%c0_17, %c0_18, %c0_19, %c0_20], %56 {strides = array<i32>} : memref<1x3x32x32xf32, #tpu.memory_space<vmem>>, vector<1x3x32x32xf32>,
    return
  }
  func.func @transform_0(%arg0: i32) -> (i32, i32, i32, i32) {
    %c0_i32 = arith.constant 0 : i32
    %c0_i32_0 = arith.constant 0 : i32
    %c0_i32_1 = arith.constant 0 : i32
    %c0_i32_2 = arith.constant 0 : i32
    return %arg0, %c0_i32, %c0_i32_0, %c0_i32_1 : i32, i32, i32, i32
  }
  func.func @transform_1(%arg0: i32) -> (i32, i32, i32, i32) {
    %c0_i32 = arith.constant 0 : i32
    %c0_i32_0 = arith.constant 0 : i32
    %c0_i32_1 = arith.constant 0 : i32
    %c0_i32_2 = arith.constant 0 : i32
    return %arg0, %c0_i32, %c0_i32_0, %c0_i32_1 : i32, i32, i32, i32
  }
}

</mosaic_0001>

<bundles_post_ra>
// kernel: tpu_custom_call.1
= control target key start
LH: loop header
LB: loop body
LE: loop exit
PB: predicated region body
PF: predicated region fallthrough
CT: control target
= control target key end

     0   :  { %6 = vsyncpa [#allocation3], 0  ;;  %s2180_s0 = inlined_call_operand.vmem [shape: f32[2,3,34,34], index: 0, kind: input, shape index: {}]   ;;  %s2181_s1 = inlined_call_operand.hbm [shape: f32[2,3,32,32], index: 1, kind: output, shape index: {}]  }
   0x1   :  { %8 = vsyncpa [#allocation3 + $0x1], 0  ;;  %s1147_s6 = smov 0   ;;  %s1149_s7 = smov 0  }
   0x2   :  { %s1151_s8 = smov 0   ;;  %s1153_s9 = smov 0  }
   0x3 LB: > { %s1168_s10 = sadd.s32 4294967295, %s1130_s9   ;;  %s992_s11 = sadd.s32 4294967294, %s1130_s9   ;;  %s1130_s9 = sphi %s1153_s9, %s2276_s9   ;;  %s1126_s8 = sphi %s1151_s8, %s2275_s8   ;;  %s1122_s7 = sphi %s1149_s7, %s2274_s7   ;;  %s1118_s6 = sphi %s1147_s6, %s2273_s6  }
   0x4   : > { %s1172_s12 = sadd.s32 1, %s1130_s9   ;;  %s47_s13 = sadd.s32 1, %s1126_s8 }
   0x5   : > { %s44_s14 = ssub.s32 %s1130_s9, %s1172_s12  ;;  %p57_p0 = scmp.ne.s32.totalorder %s1126_s8, %s1122_s7 }
   0x6   : > { %p45_p1 = scmp.eq.s32.totalorder %s44_s14, 0  ;;  %p58_p2 = scmp.eq.s32.totalorder %s1168_s10, 1 }
   0x7   : > { %p63_p3 = scmp.ne.s32.totalorder %s1122_s7, %s1118_s6  ;;  %p64_p4 = scmp.eq.s32.totalorder %s992_s11, 1 }
   0x8   : > { %s1183_s15 = scalar_select %p45_p1, %s1126_s8, %s47_s13  }
   0x9   : > { %p1185_p5 = por %p58_p2, %p57_p0  ;;  %p1189_p6 = por %p64_p4, %p63_p3 }
   0xa   : > { %p995_p7 = scmp.ge.s32.totalorder %s1130_s9, 1  ;;  %p90_p8 = scmp.lt.s32.totalorder %s1130_s9, 3 }
   0xc   : > { %p91_p9 = pnand %p995_p7, %p90_p8 }
   0xe   : > { %94 = sbr.rel (%p91_p9) target bundleno = 330 (0x14a), region = 24 }
  0x13   : > { %p110_p10 = scmp.lt.s32.totalorder %s1168_s10, 1  ;;  %s1132_s23 = smov 127   ;;  %vm364_vm0 = vcmask 1046528   ;;  %vm527_vm1 = vcmask 1045504   ;;  %vm903_vm2 = vcmask 261120  }
  0x14   : > { %s1133_s24 = smov 126   ;;  %s107_s25 = sand.u32 1, %s1122_s7  }
  0x15   : > { %s111_s18 = scalar_select %p110_p10, %s1168_s10, 1 }
  0x16   : > { %s2031_s26 = smul.u32 96, %s107_s25  ;;  %s2140_s4 = scalar_lea.sflag [#allocation3], %s107_s25 }
  0x17   : > { %s1001_s19 = smul.u32 120, %s111_s18 }
  0x18   : > { %s2059_s27 = scalar_lea.vmem [#allocation2], %s2031_s26  ;;  %s1002_s28 = smul.u32 1536, %s1168_s10 }
  0x19   : > { %s1200_s22 = scalar_lea.vmem %s2180_s0, %s1001_s19  ;;  %s930_s29 = sshll.u32 %s2059_s27, 4  ;;  %s2134_s29 = int_to_ptr.vmem [resolvable:$true] %s930_s29 }
  0x1a   : > { %v1203_v0 = vld [vmem:[%s1200_s22 + $0x10] sm:$0xff]  ;;  %v1206_v1 = vld [vmem:[%s1200_s22] sm:$0xff]  ;;  %v1209_v2 = vld [vmem:[%s1200_s22 + $0x18] sm:$0xff]  ;;  %s2132_s3 = scalar_lea.hbm %s2181_s1, %s1002_s28  ;;  %s1070_s5 = scalar_lea.vmem %s2134_s29, 1536 }
  0x1b   : > { %v1212_v3 = vmul.f32 -0.25, %v1203_v0  ;;  %v1215_v4 = vmul.f32 -0.25, %v1206_v1  ;;  %v1218_v5 = vld [vmem:[%s1200_s22 + $0x8] sm:$0xff]  ;;  %v1221_v6 = vld [vmem:[%s1200_s22 + $0x30] sm:$0xff]  ;;  %v1231_v8 = vmul.f32 -0.25, %v1209_v2  ;;  %v1237_v10 = vld [vmem:[%s1200_s22 + $0x40] sm:$0xff]  ;;  %p1071_p11 = scmp.ne.s32.totalorder %s2134_s29, %s1070_s5 }
  0x1c   : > { %v1224_v7 = vld [vmem:[%s1200_s22 + $0x28] sm:$0xff]  ;;  %v1234_v9 = vmul.f32 -0.25, %v1218_v5  ;;  %2195 = vst [vmem:[#allocation5_spill] sm:$0xff] %v1237_v10  ;;  %v1240_v11 = vld [vmem:[%s1200_s22 + $0x38] sm:$0xff]  ;;  %v1243_v12 = vmul.f32 -0.25, %v1221_v6  ;;  %v1252_v15 = vld [vmem:[%s1200_s22 + $0x50] sm:$0xff] }
  0x1d   : > { %182 = vrot.lane.b32.xlu1 %v1212_v3, %s1132_s23  ;;  %178 = vrot.lane.b32.xlu0 %v1215_v4, %s1132_s23  ;;  %2196 = vst [vmem:[#allocation6_spill] sm:$0xff] %v1240_v11  ;;  %v1246_v13 = vmul.f32 -0.25, %v1224_v7  ;;  %v1249_v14 = vld [vmem:[%s1200_s22 + $0x58] sm:$0xff]  ;;  %v1255_v16 = vld [vmem:[%s1200_s22 + $0x68] sm:$0xff]  ;;  %v1261_v20 = vmul.f32 -0.25, %v1237_v10  ;;  %v1274_v25 = vmul.f32 -0.25, %v1240_v11  ;;  %p1072_p12 = pnand %p1071_p11, %p1185_p5 }
  0x1e   : > { %2197 = vst [vmem:[#allocation7_spill] sm:$0xff] %v1249_v14  ;;  %v1264_v21 = vld [vmem:[%s1200_s22 + $0x60] sm:$0xff]  ;;  %v1278_v27 = vmul.f32 -0.25, %v1249_v14  ;;  %v1281_v28 = vmul.f32 -0.25, %v1252_v15  ;;  %v1284_v29 = vmul.f32 -0.25, %v1255_v16  ;;  %v1291_v32 = vmul.f32 0.125, %v1218_v5 }
  0x1f   : > { %2198 = vst [vmem:[#allocation8_spill] sm:$0xff] %v1264_v21  ;;  %v1288_v31 = vmul.f32 -0.25, %v1264_v21  ;;  %v1294_v33 = vmul.f32 0.125, %v1206_v1  ;;  %v1300_v37 = vmul.f32 0.125, %v1209_v2  ;;  %v1310_v41 = vmul.f32 0.125, %v1203_v0  ;;  %p1073_p13 = pneg %p1072_p12  ;;  %s1134_s10 = smov [#allocation2]  }
  0x20   : > { %v1314_v43 = vmul.f32 0.125, %v1221_v6  ;;  %v1317_v44 = vmul.f32 0.125, %v1224_v7  ;;  %v1320_v45 = vmul.f32 0.125, %v1237_v10  ;;  %v1324_v47 = vmul.f32 0.125, %v1240_v11  ;;  %v1341_v54 = vld [vmem:[%s1200_s22 + $0x20] sm:$0x3] }
  0x21   : > { %184 = vrot.lane.b32.xlu1 %v1231_v8, %s1132_s23  ;;  %180 = vrot.lane.b32.xlu0 %v1234_v9, %s1132_s23  ;;  %v1327_v48 = vmul.f32 0.125, %v1249_v14  ;;  %v1330_v49 = vmul.f32 0.125, %v1252_v15  ;;  %v1335_v52 = vmul.f32 0.125, %v1255_v16  ;;  %v1338_v53 = vmul.f32 0.125, %v1264_v21  ;;  %v1368_v30 = vld [vmem:[%s1200_s22 + $0x48] sm:$0x3] }
  0x22   : > { %v417_v61 = vmul.f32 0.25, %v1218_v5  ;;  %v418_v62 = vmul.f32 0.25, %v1203_v0  ;;  %v416_v63 = vmul.f32 0.25, %v1206_v1  ;;  %v419_v36 = vmul.f32 0.25, %v1209_v2  ;;  %v1392_v42 = vld [vmem:[%s1200_s22 + $0x70] sm:$0x3] }
  0x23   : > { %v420_v35 = vmul.f32 0.25, %v1341_v54  ;;  %v1359_v34 = vmul.f32 0.25, %v1221_v6  ;;  %v1362_v24 = vmul.f32 0.25, %v1240_v11  ;;  %v1365_v23 = vmul.f32 0.25, %v1224_v7  ;;  %s1074_s11 = sshll.u32 %s1134_s10, 4  ;;  %s1075_s11 = int_to_ptr.vmem [resolvable:$false] %s1074_s11 }
  0x24   : > { %v447_v38 = vrot.slane %v417_v61, 1  ;;  %v449_v26 = vrot.slane %v418_v62, 1  ;;  %v446_v19 = vrot.slane %v416_v63, 1  ;;  %v451_v18 = vrot.slane %v419_v36, 1  ;;  %s1076_s13 = scalar_lea.vmem %s1075_s11, 3072  ;;  %p1077_p0 = scmp.lt.s32.totalorder %s2134_s29, %s1075_s11 }
  0x25   : > { %188 = vrot.lane.b32.xlu1 %v1243_v12, %s1132_s23  ;;  %186 = vrot.lane.b32.xlu0 %v1246_v13, %s1132_s23  ;;  %v453_v22 = vrot.slane %v420_v35, 1  ;;  %v456_v17 = vrot.slane %v1359_v34, 1  ;;  %v458_v58 = vrot.slane %v1362_v24, 1  ;;  %v455_v57 = vrot.slane %v1365_v23, 1  ;;  %p1078_p1 = scmp.lt.s32.totalorder %s1076_s13, %s1070_s5 }
  0x26   : > { %v1376_v59 = vsel %vm364_vm0, %v447_v38, %v449_v26  ;;  %v424_v60 = vmul.f32 0.25, %v1237_v10  ;;  %v1382_v55 = vsel %vm364_vm0, %v446_v19, %v447_v38  ;;  %v1388_v50 = vsel %vm364_vm0, %v449_v26, %v451_v18 }
  0x27   : > { %2199 = vst [vmem:[#allocation9_spill] sm:$0xff] %v1376_v59  ;;  %2200 = vst [vmem:[#allocation10_spill] sm:$0xff] %v1382_v55  ;;  %v1385_v51 = vsel %vm364_vm0, %v451_v18, %v453_v22  ;;  %v425_v56 = vmul.f32 0.25, %v1368_v30  ;;  %v1395_v40 = vsel %vm364_vm0, %v456_v17, %v458_v58  ;;  %v1398_v39 = vsel %vm364_vm0, %v455_v57, %v456_v17  ;;  %p1079_p2 = por %p1078_p1, %p1077_p0 }
  0x28   : > { %2201 = vst [vmem:[#allocation11_spill] sm:$0xff] %v1385_v51  ;;  %2202 = vst [vmem:[#allocation12_spill] sm:$0xff] %v1388_v50  ;;  %v460_v46 = vrot.slane %v424_v60, 1  ;;  %v427_v19 = vmul.f32 0.25, %v1249_v14  ;;  %v428_v22 = vmul.f32 0.25, %v1264_v21  ;;  %v426_v26 = vmul.f32 0.25, %v1252_v15 }
  0x29   : > { %192 = vrot.lane.b32.xlu1 %v1261_v20, %s1132_s23  ;;  %190 = vrot.lane.b32.xlu0 %v1274_v25, %s1132_s23  ;;  %2203 = vst [vmem:[#allocation13_spill] sm:$0xff] %v1395_v40  ;;  %2204 = vst [vmem:[#allocation14_spill] sm:$0xff] %v1398_v39  ;;  %v462_v18 = vrot.slane %v425_v56, 1  ;;  %v429_v38 = vmul.f32 0.25, %v1255_v16  ;;  %v430_v57 = vmul.f32 0.25, %v1392_v42  ;;  %v637_v39 = vrot.slane %v417_v61, 2  ;;  %p1080_p3 = pnand %p1079_p2, %p1073_p13 }
  0x2a   : > { %v1409_v40 = vsel %vm364_vm0, %v458_v58, %v460_v46  ;;  %v465_v17 = vrot.slane %v427_v19, 1  ;;  %v467_v51 = vrot.slane %v428_v22, 1  ;;  %v464_v55 = vrot.slane %v426_v26, 1 }
  0x2b   : > { %2205 = vst [vmem:[#allocation15_spill] sm:$0xff] %v1409_v40  ;;  %v1413_v50 = vsel %vm364_vm0, %v460_v46, %v462_v18  ;;  %v469_v59 = vrot.slane %v429_v38, 1  ;;  %v471_v14 = vrot.slane %v430_v57, 1  ;;  %v639_v11 = vrot.slane %v418_v62, 2 }
  0x2c   : > { %v636_v21 = vrot.slane %v416_v63, 2  ;;  %v641_v10 = vrot.slane %v419_v36, 2  ;;  %v1420_v58 = vsel %vm364_vm0, %v465_v17, %v467_v51  ;;  %v1423_v46 = vsel %vm364_vm0, %v464_v55, %v465_v17 }
  0x2d   : > { %196 = vrot.lane.b32.xlu1 %v1278_v27, %s1132_s23  ;;  %194 = vrot.lane.b32.xlu0 %v1281_v28, %s1132_s23  ;;  %2206 = vst [vmem:[#allocation16_spill] sm:$0xff] %v1420_v58  ;;  %v1426_v61 = vsel %vm364_vm0, %v467_v51, %v469_v59  ;;  %v643_v18 = vrot.slane %v420_v35, 2  ;;  %v1429_v62 = vsel %vm364_vm0, %v469_v59, %v471_v14  ;;  %v646_v55 = vrot.slane %v1359_v34, 2 }
  0x2e   : > { %2207 = vst [vmem:[#allocation17_spill] sm:$0xff] %v1426_v61  ;;  %v1432_v36 = vsel %vm527_vm1, %v637_v39, %v639_v11  ;;  %v1435_v63 = vsel %vm527_vm1, %v636_v21, %v637_v39  ;;  %v1438_v40 = vsel %vm527_vm1, %v639_v11, %v641_v10  ;;  %v648_v51 = vrot.slane %v1362_v24, 2 }
  0x2f   : > { %v1441_v58 = vsel %vm527_vm1, %v641_v10, %v643_v18  ;;  %v645_v35 = vrot.slane %v1365_v23, 2  ;;  %v650_v14 = vrot.slane %v424_v60, 2  ;;  %v652_v59 = vrot.slane %v425_v56, 2 }
  0x30   : > { %v655_v17 = vrot.slane %v427_v19, 2  ;;  %v657_v61 = vrot.slane %v428_v22, 2  ;;  %v1451_v11 = vsel %vm527_vm1, %v646_v55, %v648_v51  ;;  %v654_v21 = vrot.slane %v426_v26, 2 }
  0x31   : > { %200 = vrot.lane.b32.xlu1 %v1284_v29, %s1132_s23  ;;  %198 = vrot.lane.b32.xlu0 %v1288_v31, %s1132_s23  ;;  %v1454_v10 = vsel %vm527_vm1, %v645_v35, %v646_v55  ;;  %v659_v24 = vrot.slane %v429_v38, 2  ;;  %v1457_v23 = vsel %vm527_vm1, %v650_v14, %v652_v59  ;;  %v1460_v34 = vsel %vm527_vm1, %v648_v51, %v650_v14 }
  0x32   : > { %v1463_v39 = vsel %vm527_vm1, %v655_v17, %v657_v61  ;;  %v661_v56 = vrot.slane %v430_v57, 2  ;;  %v1466_v60 = vsel %vm527_vm1, %v654_v21, %v655_v17  ;;  %v2208_v22 = vrot.slane %v1310_v41, 2 }
  0x33   : > { %v1469_v19 = vsel %vm527_vm1, %v657_v61, %v659_v24  ;;  %v2209_v26 = vrot.slane %v1291_v32, 2  ;;  %v2211_v55 = vrot.slane %v1294_v33, 2  ;;  %v579_v61 = vmul.f32 0.125, %v1341_v54 }
  0x34   : > { %v1486_v57 = vsel %vm527_vm1, %v659_v24, %v661_v56  ;;  %v2212_v35 = vrot.slane %v1300_v37, 2  ;;  %v2213_v14 = vmov %v2208_v22  ;;  %v2214_v17 = vrot.slane %v1324_v47, 2 }
  0x35   : > { %252 = vrot.lane.b32.xlu1 %v1291_v32, %s1133_s24  ;;  %250 = vrot.lane.b32.xlu0 %v1294_v33, %s1133_s24  ;;  %v1476_v38 = vsel %vm527_vm1, %v2209_v26, %v2208_v22  ;;  %v2210_v18 = vmov %v2209_v26  ;;  %v2215_v32 = vrot.slane %v1314_v43, 2  ;;  %v580_v56 = vmul.f32 0.125, %v1368_v30 }
  0x36   : > { %v1483_v51 = vsel %vm527_vm1, %v2211_v55, %v2210_v18  ;;  %v1494_v59 = vsel %vm527_vm1, %v2213_v14, %v2212_v35  ;;  %v2218_v22 = vrot.slane %v1320_v45, 2  ;;  %v2219_v26 = vmov %v2214_v17 }
  0x37   : > { %v1501_v33 = vsel %vm527_vm1, %v2215_v32, %v2214_v17  ;;  %v2216_v21 = vmov %v2215_v32  ;;  %v2221_v55 = vrot.slane %v1338_v53, 2  ;;  %v2222_v35 = vrot.slane %v1327_v48, 2 }
  0x38   : > { %v1520_v18 = vsel %vm527_vm1, %v2219_v26, %v2218_v22  ;;  %v2225_v17 = vrot.slane %v1330_v49, 2 }
  0x39   : > { %256 = vrot.lane.b32.xlu1 %v1300_v37, %s1133_s24  ;;  %254 = vrot.lane.b32.xlu0 %v1310_v41, %s1133_s24  ;;  %v2217_v41 = vrot.slane %v1317_v44, 2  ;;  %2220 = vst [vmem:[#allocation18_spill] sm:$0xff] %v1520_v18  ;;  %v2224_v14 = vmov %v2222_v35  ;;  %v2228_v22 = vmov %v2221_v55  ;;  %v601_v18 = vrot.slane %v580_v56, 2 }
  0x3a   : > { %v1534_v32 = vsel %vm527_vm1, %v2225_v17, %v2224_v14  ;;  %v2233_v17 = vrot.slane %v1215_v4, 1  ;;  %v2236_v4 = vrot.slane %v1274_v25, 1 }
  0x3b   : > { %v1512_v24 = vsel %vm527_vm1, %v2217_v41, %v2216_v21  ;;  %2226 = vst [vmem:[#allocation20_spill] sm:$0xff] %v1534_v32  ;;  %v581_v21 = vmul.f32 0.125, %v1392_v42  ;;  %v2227_v41 = vrot.slane %v1335_v52, 2 }
  0x3d   : > { %260 = vrot.lane.b32.xlu1 %v1314_v43, %s1133_s24  ;;  %258 = vrot.lane.b32.xlu0 %v1317_v44, %s1133_s24  ;;  %v1527_v43 = vsel %vm527_vm1, %v2222_v35, %v2221_v55  ;;  %v592_v44 = vrot.slane %v579_v61, 2  ;;  %v1542_v26 = vsel %vm527_vm1, %v2228_v22, %v2227_v41  ;;  %v2230_v55 = vrot.slane %v1212_v3, 1 }
  0x3e   : > { %2223 = vst [vmem:[#allocation19_spill] sm:$0xff] %v1527_v43  ;;  %2229 = vst [vmem:[#allocation21_spill] sm:$0xff] %v1542_v26  ;;  %v2231_v61 = vrot.slane %v1234_v9, 1  ;;  %v358_v43 = vmul.f32 -0.25, %v1341_v54  ;;  %v2234_v41 = vrot.slane %v1300_v37, 2  ;;  %v610_v22 = vrot.slane %v581_v21, 2 }
  0x3f   : > { %v2235_v26 = vrot.slane %v1231_v8, 1  ;;  %v2237_v9 = vrot.slane %v1243_v12, 1  ;;  %v2238_v37 = vrot.slane %v1320_v45, 2  ;;  %v2244_v12 = vrot.slane %v1288_v31, 1 }
  0x40   : > { %v1549_v35 = vsel %vm364_vm0, %v2231_v61, %v2230_v55  ;;  %v2232_v14 = vmov %v2231_v61  ;;  %v1562_v56 = vsel %vm527_vm1, %v2234_v41, %v592_v44  ;;  %v372_v44 = vrot.slane %v358_v43, 1 }
  0x41   : > { %v1556_v32 = vsel %vm364_vm0, %v2233_v17, %v2232_v14  ;;  %v1569_v61 = vsel %vm364_vm0, %v2230_v55, %v2235_v26  ;;  %v1576_v14 = vsel %vm364_vm0, %v2237_v9, %v2236_v4  ;;  %264 = vrot.lane.b32.xlu1 %v1320_v45, %s1133_s24  ;;  %262 = vrot.lane.b32.xlu0 %v1324_v47, %s1133_s24  ;;  %v2240_v26 = vrot.slane %v1246_v13, 1 }
  0x42   : > { %v1585_v3 = vsel %vm527_vm1, %v2238_v37, %v601_v18  ;;  %v2239_v21 = vmov %v2237_v9  ;;  %v359_v41 = vmul.f32 -0.25, %v1368_v30  ;;  %v2241_v55 = vrot.slane %v1335_v52, 2 }
  0x43   : > { %v1592_v17 = vsel %vm364_vm0, %v2240_v26, %v2239_v21  ;;  %v2242_v45 = vrot.slane %v1261_v20, 1  ;;  %v2243_v47 = vrot.slane %v1274_v25, 1  ;;  %v2245_v13 = vrot.slane %v1278_v27, 1 }
  0x44   : > { %v1598_v4 = vsel %vm527_vm1, %v2241_v55, %v610_v22  ;;  %v2247_v37 = vrot.slane %v1281_v28, 1  ;;  %v2248_v21 = vrot.slane %v1231_v8, 1  ;;  %v381_v26 = vrot.slane %v359_v41, 1 }
  0x45   : > { %v1605_v18 = vsel %vm364_vm0, %v2243_v47, %v2242_v45  ;;  %v1612_v43 = vsel %vm364_vm0, %v2245_v13, %v2244_v12  ;;  %v2246_v9 = vmov %v2245_v13  ;;  %v360_v55 = vmul.f32 -0.25, %v1392_v42  ;;  %268 = vrot.lane.b32.xlu1 %v1327_v48, %s1133_s24  ;;  %266 = vrot.lane.b32.xlu0 %v1330_v49, %s1133_s24  ;;  %v2254_v49 = vld [vmem:[#allocation6_spill] sm:$0xff] }
  0x46   : > { %v1619_v22 = vsel %vm364_vm0, %v2247_v37, %v2246_v9  ;;  %v1624_v25 = vsel %vm364_vm0, %v2248_v21, %v372_v44  ;;  %v2249_v45 = vrot.slane %v1284_v29, 1  ;;  %v2250_v47 = vmov %v2244_v12 }
  0x47   : > { %v2251_v8 = vrot.slane %v1261_v20, 1  ;;  %v390_v28 = vrot.slane %v360_v55, 1  ;;  %v1653_v31 = vmul.f32 -0.125, %v1218_v5  ;;  %v1656_v20 = vmul.f32 -0.125, %v1206_v1 }
  0x48   : > { %v1632_v12 = vsel %vm364_vm0, %v2250_v47, %v2249_v45  ;;  %v2252_v44 = vmov %v2249_v45  ;;  %v1663_v29 = vmul.f32 -0.125, %v1209_v2  ;;  %v1666_v48 = vmul.f32 -0.125, %v1203_v0  ;;  %v2253_v0 = vld [vmem:[#allocation5_spill] sm:$0xff] }
  0x49   : > { %v1641_v27 = vsel %vm364_vm0, %v2251_v8, %v381_v26  ;;  %v1646_v41 = vsel %vm364_vm0, %v2252_v44, %v390_v28  ;;  %272 = vrot.lane.b32.xlu1 %v1335_v52, %s1133_s24  ;;  %270 = vrot.lane.b32.xlu0 %v1338_v53, %s1133_s24  ;;  %v1673_v1 = vmul.f32 -0.125, %v1221_v6  ;;  %v1676_v5 = vmul.f32 -0.125, %v1224_v7  ;;  %v2255_v6 = vld [vmem:[#allocation7_spill] sm:$0xff]  ;;  %v2256_v26 = vld [vmem:[#allocation8_spill] sm:$0xff]  ;;  %v2257_v47 = vld [vmem:[#allocation9_spill] sm:$0xff] }
  0x4a   : > { %v1683_v2 = vmul.f32 -0.125, %v2253_v0  ;;  %v1686_v52 = vmul.f32 -0.125, %v2254_v49  ;;  %v1693_v7 = vmul.f32 -0.125, %v2255_v6  ;;  %v1696_v53 = vmul.f32 -0.125, %v1252_v15  ;;  %v2258_v8 = vld [vmem:[#allocation10_spill] sm:$0xff]  ;;  %v2259_v44 = vld [vmem:[#allocation11_spill] sm:$0xff] }
  0x4b   : > { %v521_v13 = vmul.f32 -0.125, %v1341_v54  ;;  %v2192_v9 = vrot.slane %v1663_v29, 2  ;;  %v1705_v21 = vmul.f32 -0.125, %v1255_v16  ;;  %v1708_v55 = vmul.f32 -0.125, %v2256_v26  ;;  %v2260_v0 = vld [vmem:[#allocation12_spill] sm:$0xff]  ;;  %v2262_v49 = vld [vmem:[#allocation14_spill] sm:$0xff] }
  0x4c   : > { %v522_v54 = vmul.f32 -0.125, %v1368_v30  ;;  %v2191_v45 = vrot.slane %v1683_v2, 2  ;;  %v2261_v30 = vld [vmem:[#allocation13_spill] sm:$0xff]  ;;  %v2263_v6 = vld [vmem:[#allocation15_spill] sm:$0xff] }
  0x4d   : > { %312 = vrot.lane.b32.xlu1 %v1653_v31, %s1133_s24  ;;  %310 = vrot.lane.b32.xlu0 %v1656_v20, %s1133_s24  ;;  %v535_v37 = vrot.slane %v521_v13, 2  ;;  %v523_v13 = vmul.f32 -0.125, %v1392_v42 }
  0x4e   : > { %v544_v16 = vrot.slane %v522_v54, 2  ;;  %v2264_v54 = vld [vmem:[#allocation16_spill] sm:$0xff] }
  0x4f   : > { %v1713_v15 = vsel %vm527_vm1, %v2192_v9, %v535_v37  ;;  %v2190_v37 = vrot.slane %v1705_v21, 2  ;;  %v553_v26 = vrot.slane %v523_v13, 2 }
  0x50   : > { %v1728_v28 = vsel %vm527_vm1, %v2191_v45, %v544_v16 }
  0x51   : > { %316 = vrot.lane.b32.xlu1 %v1663_v29, %s1133_s24  ;;  %314 = vrot.lane.b32.xlu0 %v1666_v48, %s1133_s24  ;;  %v1751_v16 = vsel %vm527_vm1, %v2190_v37, %v553_v26 }
  0x55   : > { %320 = vrot.lane.b32.xlu1 %v1673_v1, %s1133_s24  ;;  %318 = vrot.lane.b32.xlu0 %v1676_v5, %s1133_s24 }
  0x59   : > { %324 = vrot.lane.b32.xlu1 %v1683_v2, %s1133_s24  ;;  %322 = vrot.lane.b32.xlu0 %v1686_v52, %s1133_s24 }
  0x5d   : > { %328 = vrot.lane.b32.xlu1 %v1693_v7, %s1133_s24  ;;  %326 = vrot.lane.b32.xlu0 %v1696_v53, %s1133_s24 }
  0x61   : > { %332 = vrot.lane.b32.xlu1 %v1705_v21, %s1133_s24  ;;  %330 = vrot.lane.b32.xlu0 %v1708_v55, %s1133_s24 }
  0x65   : > { %475 = vrot.lane.b32.xlu1 %v2257_v47, %s1133_s24  ;;  %473 = vrot.lane.b32.xlu0 %v2258_v8, %s1133_s24 }
  0x69   : > { %479 = vrot.lane.b32.xlu1 %v2259_v44, %s1133_s24  ;;  %477 = vrot.lane.b32.xlu0 %v2260_v0, %s1133_s24 }
  0x6d   : > { %483 = vrot.lane.b32.xlu1 %v2261_v30, %s1133_s24  ;;  %481 = vrot.lane.b32.xlu0 %v2262_v49, %s1133_s24  ;;  %v2269_v30 = vld [vmem:[#allocation21_spill] sm:$0xff] }
  0x71   : > { %487 = vrot.lane.b32.xlu1 %v1413_v50, %s1133_s24  ;;  %485 = vrot.lane.b32.xlu0 %v2263_v6, %s1133_s24  ;;  %v2265_v50 = vld [vmem:[#allocation17_spill] sm:$0xff] }
  0x75   : > { %491 = vrot.lane.b32.xlu1 %v2264_v54, %s1133_s24  ;;  %489 = vrot.lane.b32.xlu0 %v1423_v46, %s1133_s24 }
  0x79   : > { %495 = vrot.lane.b32.xlu1 %v1429_v62, %s1133_s24  ;;  %493 = vrot.lane.b32.xlu0 %v2265_v50, %s1133_s24 }
  0x7d   : > { %665 = vrot.lane.b32.xlu1 %v1432_v36, %s1132_s23  ;;  %663 = vrot.lane.b32.xlu0 %v1435_v63, %s1132_s23 }
  0x81   : > { %669 = vrot.lane.b32.xlu1 %v1441_v58, %s1132_s23  ;;  %667 = vrot.lane.b32.xlu0 %v1438_v40, %s1132_s23 }
  0x85   : > { %673 = vrot.lane.b32.xlu1 %v1451_v11, %s1132_s23  ;;  %671 = vrot.lane.b32.xlu0 %v1454_v10, %s1132_s23 }
  0x89   : > { %677 = vrot.lane.b32.xlu1 %v1457_v23, %s1132_s23  ;;  %675 = vrot.lane.b32.xlu0 %v1460_v34, %s1132_s23  ;;  %v2266_v34 = vld [vmem:[#allocation18_spill] sm:$0xff] }
  0x8d   : > { %681 = vrot.lane.b32.xlu1 %v1463_v39, %s1132_s23  ;;  %679 = vrot.lane.b32.xlu0 %v1466_v60, %s1132_s23 }
  0x8f   : > { %v1777_v42 = vpop.permute.xlu1 %182  ;;  %v179_v40 = vpop.permute.xlu0 %178 }
  0x90   : > { %v216_v9 = vadd.f32 %v1777_v42, %v1666_v48 }
  0x91   : > { %685 = vrot.lane.b32.xlu1 %v1486_v57, %s1132_s23  ;;  %683 = vrot.lane.b32.xlu0 %v1469_v19, %s1132_s23  ;;  %v2267_v19 = vld [vmem:[#allocation19_spill] sm:$0xff]  ;;  %v2268_v57 = vld [vmem:[#allocation20_spill] sm:$0xff] }
  0x93   : > { %v1783_v58 = vpop.permute.xlu1 %184  ;;  %v181_v46 = vpop.permute.xlu0 %180 }
  0x95   : > { %713 = vrot.lane.b32.xlu1 %v1476_v38, %s1133_s24  ;;  %711 = vrot.lane.b32.xlu0 %v1483_v51, %s1133_s24 }
  0x97   : > { %v1789_v62 = vpop.permute.xlu1 %188  ;;  %v1791_v36 = vpop.permute.xlu0 %186 }
  0x99   : > { %717 = vrot.lane.b32.xlu1 %v1562_v56, %s1133_s24  ;;  %715 = vrot.lane.b32.xlu0 %v1494_v59, %s1133_s24 }
  0x9b   : > { %v1797_v63 = vpop.permute.xlu1 %192  ;;  %v1799_v11 = vpop.permute.xlu0 %190 }
  0x9d   : > { %721 = vrot.lane.b32.xlu1 %v1501_v33, %s1133_s24  ;;  %719 = vrot.lane.b32.xlu0 %v1512_v24, %s1133_s24 }
  0x9f   : > { %v1805_v10 = vpop.permute.xlu1 %196  ;;  %v1807_v23 = vpop.permute.xlu0 %194 }
  0xa1   : > { %725 = vrot.lane.b32.xlu1 %v1585_v3, %s1133_s24  ;;  %723 = vrot.lane.b32.xlu0 %v2266_v34, %s1133_s24 }
  0xa3   : > { %v1813_v39 = vpop.permute.xlu1 %200  ;;  %v1815_v60 = vpop.permute.xlu0 %198 }
  0xa5   : > { %729 = vrot.lane.b32.xlu1 %v2267_v19, %s1133_s24  ;;  %727 = vrot.lane.b32.xlu0 %v2268_v57, %s1133_s24 }
  0xa7   : > { %v253_v47 = vpop.permute.xlu1 %252  ;;  %v251_v8 = vpop.permute.xlu0 %250 }
  0xa8   : > { %v287_v44 = vadd.f32 %v253_v47, %v1653_v31  ;;  %v286_v0 = vadd.f32 %v251_v8, %v1656_v20 }
  0xa9   : > { %733 = vrot.lane.b32.xlu1 %v1598_v4, %s1133_s24  ;;  %731 = vrot.lane.b32.xlu0 %v2269_v30, %s1133_s24 }
  0xaa   : > { %v1828_v49 = vadd.f32 %v1549_v35, %v287_v44  ;;  %v1831_v6 = vadd.f32 %v1556_v32, %v286_v0 }
  0xab   : > { %v257_v13 = vpop.permute.xlu1 %256  ;;  %v255_v26 = vpop.permute.xlu0 %254 }
  0xac   : > { %v289_v54 = vadd.f32 %v257_v13, %v1663_v29  ;;  %v288_v50 = vadd.f32 %v255_v26, %v1666_v48 }
  0xae   : > { %v1836_v47 = vadd.f32 %v1624_v25, %v289_v54  ;;  %v1839_v8 = vadd.f32 %v1569_v61, %v288_v50 }
  0xaf   : > { %v261_v37 = vpop.permute.xlu1 %260  ;;  %v259_v45 = vpop.permute.xlu0 %258 }
  0xb0   : > { %v291_v35 = vadd.f32 %v261_v37, %v1673_v1  ;;  %v290_v44 = vadd.f32 %v259_v45, %v1676_v5 }
  0xb2   : > { %v1844_v32 = vadd.f32 %v1576_v14, %v291_v35  ;;  %v1847_v0 = vadd.f32 %v1592_v17, %v290_v44 }
  0xb3   : > { %v265_v13 = vpop.permute.xlu1 %264  ;;  %v263_v26 = vpop.permute.xlu0 %262 }
  0xb4   : > { %v293_v25 = vadd.f32 %v265_v13, %v1683_v2  ;;  %v292_v54 = vadd.f32 %v263_v26, %v1686_v52 }
  0xb6   : > { %v1852_v61 = vadd.f32 %v1641_v27, %v293_v25  ;;  %v1855_v50 = vadd.f32 %v1605_v18, %v292_v54  ;;  %v214_v18 = vadd.f32 %v179_v40, %v1656_v20  ;;  %v215_v54 = vadd.f32 %v181_v46, %v1653_v31 }
  0xb7   : > { %v269_v37 = vpop.permute.xlu1 %268  ;;  %v267_v45 = vpop.permute.xlu0 %266 }
  0xb8   : > { %v295_v14 = vadd.f32 %v269_v37, %v1693_v7  ;;  %v294_v35 = vadd.f32 %v267_v45, %v1696_v53 }
  0xba   : > { %v1860_v17 = vadd.f32 %v1612_v43, %v295_v14  ;;  %v1863_v44 = vadd.f32 %v1619_v22, %v294_v35 }
  0xbb   : > { %v273_v13 = vpop.permute.xlu1 %272  ;;  %v271_v26 = vpop.permute.xlu0 %270 }
  0xbc   : > { %v297_v27 = vadd.f32 %v273_v13, %v1705_v21  ;;  %v296_v25 = vadd.f32 %v271_v26, %v1708_v55  ;;  %v217_v13 = vadd.f32 %v1783_v58, %v1663_v29 }
  0xbe   : > { %v1870_v37 = vadd.f32 %v1646_v41, %v297_v27  ;;  %v1873_v45 = vadd.f32 %v1632_v12, %v296_v25  ;;  %v219_v25 = vadd.f32 %v1789_v62, %v1673_v1 }
  0xbf   : > { %v313_v43 = vpop.permute.xlu1 %312  ;;  %v311_v14 = vpop.permute.xlu0 %310 }
  0xc0   : > { %v347_v22 = vadd.f32 %v313_v43, %v215_v54  ;;  %v346_v35 = vadd.f32 %v311_v14, %v214_v18  ;;  %v218_v18 = vadd.f32 %v1791_v36, %v1676_v5  ;;  %v221_v14 = vadd.f32 %v1797_v63, %v1683_v2 }
  0xc2   : > { %v1880_v40 = vadd.f32 %v1476_v38, %v347_v22  ;;  %v1883_v46 = vadd.f32 %v1483_v51, %v346_v35 }
  0xc3   : > { %v317_v41 = vpop.permute.xlu1 %316  ;;  %v315_v26 = vpop.permute.xlu0 %314 }
  0xc4   : > { %v349_v12 = vadd.f32 %v317_v41, %v217_v13  ;;  %v348_v27 = vadd.f32 %v315_v26, %v216_v9  ;;  %v220_v9 = vadd.f32 %v1799_v11, %v1686_v52  ;;  %v223_v13 = vadd.f32 %v1805_v10, %v1693_v7 }
  0xc5   : > { %v222_v41 = vadd.f32 %v1807_v23, %v1696_v53 }
  0xc6   : > { %v1890_v42 = vadd.f32 %v1562_v56, %v349_v12  ;;  %v1893_v58 = vadd.f32 %v1494_v59, %v348_v27  ;;  %v225_v27 = vadd.f32 %v1813_v39, %v1705_v21 }
  0xc7   : > { %v321_v38 = vpop.permute.xlu1 %320  ;;  %v319_v54 = vpop.permute.xlu0 %318 }
  0xc8   : > { %v351_v51 = vadd.f32 %v321_v38, %v219_v25  ;;  %v350_v43 = vadd.f32 %v319_v54, %v218_v18  ;;  %v224_v25 = vadd.f32 %v1815_v60, %v1708_v55  ;;  %v529_v38 = vrot.slane %v1653_v31, 2 }
  0xc9   : > { %v528_v54 = vrot.slane %v1656_v20, 2 }
  0xca   : > { %v1900_v62 = vadd.f32 %v1501_v33, %v351_v51  ;;  %v1903_v36 = vadd.f32 %v1512_v24, %v350_v43 }
  0xcb   : > { %v325_v56 = vpop.permute.xlu1 %324  ;;  %v323_v22 = vpop.permute.xlu0 %322 }
  0xcc   : > { %v353_v59 = vadd.f32 %v325_v56, %v221_v14  ;;  %v352_v35 = vadd.f32 %v323_v22, %v220_v9  ;;  %v530_v9 = vsel %vm527_vm1, %v528_v54, %v529_v38 }
  0xce   : > { %v1910_v63 = vadd.f32 %v1585_v3, %v353_v59  ;;  %v1913_v11 = vadd.f32 %v2266_v34, %v352_v35  ;;  %v531_v34 = vrot.slane %v1666_v48, 2  ;;  %v2270_v59 = vrot.slane %v1663_v29, 2 }
  0xcf   : > { %v329_v33 = vpop.permute.xlu1 %328  ;;  %v327_v26 = vpop.permute.xlu0 %326 }
  0xd0   : > { %v355_v24 = vadd.f32 %v329_v33, %v223_v13  ;;  %v354_v12 = vadd.f32 %v327_v26, %v222_v41  ;;  %v540_v13 = vrot.slane %v1686_v52, 2  ;;  %v537_v41 = vrot.slane %v1676_v5, 2 }
  0xd2   : > { %v1920_v10 = vadd.f32 %v2267_v19, %v355_v24  ;;  %v1923_v23 = vadd.f32 %v2268_v57, %v354_v12  ;;  %v532_v57 = vsel %vm527_vm1, %v529_v38, %v531_v34  ;;  %v546_v38 = vrot.slane %v1696_v53, 2 }
  0xd3   : > { %v333_v3 = vpop.permute.xlu1 %332  ;;  %v331_v18 = vpop.permute.xlu0 %330 }
  0xd4   : > { %v357_v51 = vadd.f32 %v333_v3, %v225_v27  ;;  %v356_v43 = vadd.f32 %v331_v18, %v224_v25  ;;  %v547_v18 = vrot.slane %v1693_v7, 2 }
  0xd6   : > { %v1929_v39 = vadd.f32 %v1598_v4, %v357_v51  ;;  %v1932_v60 = vadd.f32 %v2269_v30, %v356_v43  ;;  %v534_v4 = vsel %vm527_vm1, %v531_v34, %v2270_v59  ;;  %v538_v30 = vrot.slane %v1673_v1, 2 }
  0xd7   : > { %v476_v19 = vpop.permute.xlu1 %475  ;;  %v474_v14 = vpop.permute.xlu0 %473  ;;  %v549_v34 = vrot.slane %v1708_v55, 2 }
  0xd8   : > { %v510_v48 = vadd.f32 %v476_v19, %v1828_v49  ;;  %v509_v31 = vadd.f32 %v474_v14, %v1831_v6  ;;  %v541_v29 = vsel %vm527_vm1, %v538_v30, %v540_v13  ;;  %v539_v12 = vsel %vm527_vm1, %v537_v41, %v538_v30 }
  0xd9   : > { %v548_v19 = vsel %vm527_vm1, %v546_v38, %v547_v18 }
  0xda   : > { %v568_v56 = vadd.f32 %v532_v57, %v510_v48  ;;  %v567_v20 = vadd.f32 %v530_v9, %v509_v31 }
  0xdb   : > { %v480_v22 = vpop.permute.xlu1 %479  ;;  %v478_v35 = vpop.permute.xlu0 %477 }
  0xdc   : > { %v512_v33 = vadd.f32 %v480_v22, %v1836_v47  ;;  %v511_v49 = vadd.f32 %v478_v35, %v1839_v8 }
  0xde   : > { %v1947_v6 = vadd.f32 %v1713_v15, %v512_v33  ;;  %v1949_v26 = vadd.f32 %v534_v4, %v511_v49  ;;  %v2271_v15 = vrot.slane %v1683_v2, 2  ;;  %v550_v2 = vsel %vm527_vm1, %v547_v18, %v549_v34 }
  0xdf   : > { %v484_v24 = vpop.permute.xlu1 %483  ;;  %v482_v27 = vpop.permute.xlu0 %481 }
  0xe0   : > { %v514_v1 = vadd.f32 %v484_v24, %v1844_v32  ;;  %v513_v52 = vadd.f32 %v482_v27, %v1847_v0  ;;  %v543_v25 = vsel %vm527_vm1, %v540_v13, %v2271_v15 }
  0xe2   : > { %v1955_v5 = vadd.f32 %v541_v29, %v514_v1  ;;  %v1957_v47 = vadd.f32 %v539_v12, %v513_v52 }
  0xe3   : > { %v488_v8 = vpop.permute.xlu1 %487  ;;  %v486_v3 = vpop.permute.xlu0 %485 }
  0xe4   : > { %v516_v32 = vadd.f32 %v488_v8, %v1852_v61  ;;  %v515_v0 = vadd.f32 %v486_v3, %v1855_v50 }
  0xe6   : > { %v1968_v54 = vadd.f32 %v1728_v28, %v516_v32  ;;  %v1970_v51 = vadd.f32 %v543_v25, %v515_v0  ;;  %v2272_v28 = vrot.slane %v1705_v21, 2 }
  0xe7   : > { %v492_v43 = vpop.permute.xlu1 %491  ;;  %v490_v57 = vpop.permute.xlu0 %489 }
  0xe8   : > { %v518_v7 = vadd.f32 %v492_v43, %v1860_v17  ;;  %v517_v55 = vadd.f32 %v490_v57, %v1863_v44  ;;  %v552_v9 = vsel %vm527_vm1, %v549_v34, %v2272_v28 }
  0xea   : > { %v1976_v53 = vadd.f32 %v550_v2, %v518_v7  ;;  %v1978_v61 = vadd.f32 %v548_v19, %v517_v55 }
  0xeb   : > { %v496_v50 = vpop.permute.xlu1 %495  ;;  %v494_v14 = vpop.permute.xlu0 %493 }
  0xec   : > { %v520_v48 = vadd.f32 %v496_v50, %v1870_v37  ;;  %v519_v31 = vadd.f32 %v494_v14, %v1873_v45 }
  0xee   : > { %v1986_v22 = vadd.f32 %v1751_v16, %v520_v48  ;;  %v1988_v17 = vadd.f32 %v552_v9, %v519_v31 }
  0xef   : > { %v666_v44 = vpop.permute.xlu1 %665  ;;  %v664_v59 = vpop.permute.xlu0 %663 }
  0xf0   : > { %v700_v16 = vadd.f32 %v666_v44, %v1880_v40  ;;  %v699_v45 = vadd.f32 %v664_v59, %v1883_v46 }
  0xf3   : > { %v670_v4 = vpop.permute.xlu1 %669  ;;  %v668_v35 = vpop.permute.xlu0 %667 }
  0xf4   : > { %v702_v15 = vadd.f32 %v670_v4, %v1890_v42  ;;  %v701_v38 = vadd.f32 %v668_v35, %v1893_v58 }
  0xf7   : > { %v674_v30 = vpop.permute.xlu1 %673  ;;  %v672_v13 = vpop.permute.xlu0 %671 }
  0xf8   : > { %v704_v28 = vadd.f32 %v674_v30, %v1900_v62 }
  0xfb   : > { %v678_v41 = vpop.permute.xlu1 %677  ;;  %v676_v33 = vpop.permute.xlu0 %675 }
  0xfc   : > { %v706_v44 = vadd.f32 %v678_v41, %v1910_v63  ;;  %v705_v63 = vadd.f32 %v676_v33, %v1913_v11 }
  0xff   : > { %v682_v21 = vpop.permute.xlu1 %681  ;;  %v1990_v49 = vpop.permute.xlu0 %679 }
 0x103   : > { %v1992_v29 = vpop.permute.xlu1 %685  ;;  %v1994_v37 = vpop.permute.xlu0 %683 }
 0x107   : > { %v714_v24 = vpop.permute.xlu1 %713  ;;  %v712_v12 = vpop.permute.xlu0 %711 }
 0x108   : > { %v748_v27 = vadd.f32 %v714_v24, %v568_v56  ;;  %v760_v1 = vadd.f32 %v714_v24, %v700_v16  ;;  %v747_v52 = vadd.f32 %v712_v12, %v567_v20  ;;  %v759_v8 = vadd.f32 %v712_v12, %v699_v45 }
 0x10a   : > { %v772_v25 = vmul.f32 %v748_v27, %v748_v27  ;;  %v784_v3 = vmul.f32 %v760_v1, %v760_v1  ;;  %v771_v18 = vmul.f32 %v747_v52, %v747_v52  ;;  %v783_v34 = vmul.f32 %v759_v8, %v759_v8 }
 0x10b   : > { %v718_v32 = vpop.permute.xlu1 %717  ;;  %v716_v0 = vpop.permute.xlu0 %715 }
 0x10c   : > { %v796_v2 = vadd.f32 %v784_v3, %v772_v25  ;;  %v795_v40 = vadd.f32 %v783_v34, %v771_v18  ;;  %v750_v46 = vadd.f32 %v718_v32, %v1947_v6  ;;  %v762_v43 = vadd.f32 %v718_v32, %v702_v15 }
 0x10d   : > { %v749_v56 = vadd.f32 %v716_v0, %v1949_v26  ;;  %v761_v19 = vadd.f32 %v716_v0, %v701_v38  ;;  %v703_v6 = vadd.f32 %v672_v13, %v1903_v36 }
 0x10e   : > { %v2002_v20 = vadd.f32 1e-06, %v796_v2  ;;  %v2004_v57 = vadd.f32 1e-06, %v795_v40  ;;  %v774_v42 = vmul.f32 %v750_v46, %v750_v46  ;;  %v786_v7 = vmul.f32 %v762_v43, %v762_v43 }
 0x10f   : > { %v773_v55 = vmul.f32 %v749_v56, %v749_v56  ;;  %v785_v50 = vmul.f32 %v761_v19, %v761_v19  ;;  %v722_v14 = vpop.permute.xlu1 %721  ;;  %v720_v58 = vpop.permute.xlu0 %719 }
 0x110   : > { %1046 = vrsqrt.f32 %v2002_v20  ;;  %v798_v26 = vadd.f32 %v786_v7, %v774_v42  ;;  %v752_v48 = vadd.f32 %v722_v14, %v1955_v5  ;;  %v764_v31 = vadd.f32 %v722_v14, %v704_v28 }
 0x111   : > { %1048 = vrsqrt.f32 %v2004_v57  ;;  %v797_v9 = vadd.f32 %v785_v50, %v773_v55  ;;  %v751_v59 = vadd.f32 %v720_v58, %v1957_v47  ;;  %v763_v4 = vadd.f32 %v720_v58, %v703_v6 }
 0x112   : > { %v2013_v62 = vadd.f32 1e-06, %v798_v26  ;;  %v776_v36 = vmul.f32 %v752_v48, %v752_v48  ;;  %v788_v13 = vmul.f32 %v764_v31, %v764_v31  ;;  %v708_v47 = vadd.f32 %v682_v21, %v1920_v10 }
 0x113   : > { %v726_v35 = vpop.permute.xlu1 %725  ;;  %v724_v16 = vpop.permute.xlu0 %723  ;;  %v2015_v30 = vadd.f32 1e-06, %v797_v9  ;;  %v775_v45 = vmul.f32 %v751_v59, %v751_v59  ;;  %v787_v24 = vmul.f32 %v763_v4, %v763_v4  ;;  %vm828_vm3 = vcmp.eq.f32.partialorder %v2002_v20, inf }
 0x114   : > { %v754_v12 = vadd.f32 %v726_v35, %v1968_v54  ;;  %v766_v5 = vadd.f32 %v726_v35, %v706_v44  ;;  %1050 = vrsqrt.f32 %v2013_v62  ;;  %v800_v27 = vadd.f32 %v788_v13, %v776_v36 }
 0x115   : > { %1052 = vrsqrt.f32 %v2015_v30  ;;  %v799_v1 = vadd.f32 %v787_v24, %v775_v45  ;;  %v753_v15 = vadd.f32 %v724_v16, %v1970_v51  ;;  %v765_v25 = vadd.f32 %v724_v16, %v705_v63 }
 0x116   : > { %v778_v52 = vmul.f32 %v754_v12, %v754_v12  ;;  %v790_v8 = vmul.f32 %v766_v5, %v766_v5  ;;  %v2025_v11 = vadd.f32 1e-06, %v800_v27  ;;  %v707_v51 = vadd.f32 %v1990_v49, %v1923_v23 }
 0x117   : > { %v730_v41 = vpop.permute.xlu1 %729  ;;  %v728_v18 = vpop.permute.xlu0 %727  ;;  %v2027_v10 = vadd.f32 1e-06, %v799_v1  ;;  %v777_v21 = vmul.f32 %v753_v15, %v753_v15  ;;  %v789_v34 = vmul.f32 %v765_v25, %v765_v25  ;;  %vm830_vm4 = vcmp.eq.f32.partialorder %v2002_v20, 0.0 }
 0x118   : > { %v756_v54 = vadd.f32 %v730_v41, %v1976_v53  ;;  %v768_v3 = vadd.f32 %v730_v41, %v708_v47  ;;  %v802_v33 = vadd.f32 %v790_v8, %v778_v52  ;;  %v710_v53 = vadd.f32 %v1992_v29, %v1929_v39 }
 0x119   : > { %1054 = vrsqrt.f32 %v2025_v11  ;;  %v755_v0 = vadd.f32 %v728_v18, %v1978_v61  ;;  %v831_v40 = vand.u32 2147483648, %v2002_v20  ;;  %v801_v39 = vadd.f32 %v789_v34, %v777_v21 }
 0x11a   : > { %v780_v38 = vmul.f32 %v756_v54, %v756_v54  ;;  %v792_v32 = vmul.f32 %v768_v3, %v768_v3  ;;  %1056 = vrsqrt.f32 %v2027_v10  ;;  %v2044_v23 = vadd.f32 1e-06, %v802_v33 }
 0x11b   : > { %v734_v29 = vpop.permute.xlu1 %733  ;;  %vm821_vm5 = vcmp.eq.f32.partialorder %v2004_v57, inf  ;;  %vm823_vm6 = vcmp.eq.f32.partialorder %v2004_v57, 0.0  ;;  %v767_v56 = vadd.f32 %v728_v18, %v707_v51  ;;  %v824_v42 = vand.u32 2147483648, %v2004_v57 }
 0x11c   : > { %v804_v49 = vadd.f32 %v792_v32, %v780_v38  ;;  %1058 = vrsqrt.f32 %v2044_v23  ;;  %v779_v7 = vmul.f32 %v755_v0, %v755_v0  ;;  %v2055_v14 = vadd.f32 1e-06, %v801_v39 }
 0x11d   : > { %v1047_v2 = vpop.eup %1046  ;;  %v758_v58 = vadd.f32 %v734_v29, %v1986_v22  ;;  %v791_v26 = vmul.f32 %v767_v56, %v767_v56  ;;  %v770_v9 = vadd.f32 %v734_v29, %v710_v53  ;;  %vm842_vm7 = vcmp.eq.f32.partialorder %v2013_v62, inf  ;;  %v732_v22 = vpop.permute.xlu0 %731 }
 0x11e   : > { %v1049_v46 = vpop.eup %1048  ;;  %v827_v43 = vmul.f32 %v1047_v2, %v2002_v20  ;;  %v2063_v6 = vadd.f32 1e-06, %v804_v49  ;;  %vm844_vm8 = vcmp.eq.f32.partialorder %v2013_v62, 0.0  ;;  %1060 = vrsqrt.f32 %v2055_v14 }
 0x11f   : > { %v820_v61 = vmul.f32 %v1049_v46, %v2004_v57  ;;  %v845_v44 = vand.u32 2147483648, %v2013_v62  ;;  %vm835_vm9 = vcmp.eq.f32.partialorder %v2015_v30, inf  ;;  %v803_v59 = vadd.f32 %v791_v26, %v779_v7 }
 0x120   : > { %v829_v19 = vsel %vm828_vm3, %v2002_v20, %v827_v43  ;;  %v709_v20 = vadd.f32 %v1994_v37, %v1932_v60  ;;  %1062 = vrsqrt.f32 %v2063_v6  ;;  %v838_v37 = vand.u32 2147483648, %v2015_v30 }
 0x121   : > { %v832_v55 = vsel %vm830_vm4, %v831_v40, %v829_v19  ;;  %v822_v50 = vsel %vm821_vm5, %v2004_v57, %v820_v61  ;;  %v1051_v48 = vpop.eup %1050  ;;  %v782_v4 = vmul.f32 %v758_v58, %v758_v58  ;;  %v794_v16 = vmul.f32 %v770_v9, %v770_v9 }
 0x122   : > { %905 = vst.msk [vmem:[%s2059_s27 + $0x8] sm:$0xff] %vm903_vm2, %v832_v55  ;;  %v825_v28 = vsel %vm823_vm6, %v824_v42, %v822_v50  ;;  %v1053_v57 = vpop.eup %1052  ;;  %v841_v31 = vmul.f32 %v1051_v48, %v2013_v62  ;;  %v757_v36 = vadd.f32 %v732_v22, %v1988_v17  ;;  %v769_v13 = vadd.f32 %v732_v22, %v709_v20 }
 0x123   : > { %904 = vst.msk [vmem:[%s2059_s27] sm:$0xff] %vm903_vm2, %v825_v28  ;;  %v834_v60 = vmul.f32 %v1053_v57, %v2015_v30  ;;  %vm837_vm10 = vcmp.eq.f32.partialorder %v2015_v30, 0.0  ;;  %v815_v12 = vadd.f32 1e-06, %v803_v59  ;;  %v806_v63 = vadd.f32 %v794_v16, %v782_v4 }
 0x124   : > { %v843_v35 = vsel %vm842_vm7, %v2013_v62, %v841_v31  ;;  %v781_v47 = vmul.f32 %v757_v36, %v757_v36  ;;  %v793_v41 = vmul.f32 %v769_v13, %v769_v13  ;;  %vm856_vm11 = vcmp.eq.f32.partialorder %v2025_v11, inf }
 0x125   : > { %v846_v45 = vsel %vm844_vm8, %v845_v44, %v843_v35  ;;  %v836_v24 = vsel %vm835_vm9, %v2015_v30, %v834_v60  ;;  %1064 = vrsqrt.f32 %v815_v12  ;;  %v818_v62 = vadd.f32 1e-06, %v806_v63 }
 0x126   : > { %907 = vst.msk [vmem:[%s2059_s27 + $0x18] sm:$0xff] %vm903_vm2, %v846_v45  ;;  %v839_v5 = vsel %vm837_vm10, %v838_v37, %v836_v24  ;;  %v1055_v27 = vpop.eup %1054  ;;  %v805_v52 = vadd.f32 %v793_v41, %v781_v47  ;;  %vm858_vm12 = vcmp.eq.f32.partialorder %v2025_v11, 0.0  ;;  %v859_v30 = vand.u32 2147483648, %v2025_v11 }
 0x127   : > { %906 = vst.msk [vmem:[%s2059_s27 + $0x10] sm:$0xff] %vm903_vm2, %v839_v5  ;;  %v1057_v17 = vpop.eup %1056  ;;  %v855_v1 = vmul.f32 %v1055_v27, %v2025_v11  ;;  %vm849_vm13 = vcmp.eq.f32.partialorder %v2027_v10, inf  ;;  %v852_v25 = vand.u32 2147483648, %v2027_v10  ;;  %1066 = vrsqrt.f32 %v818_v62 }
 0x128   : > { %v848_v8 = vmul.f32 %v1057_v17, %v2027_v10  ;;  %vm851_vm14 = vcmp.eq.f32.partialorder %v2027_v10, 0.0  ;;  %v817_v33 = vadd.f32 1e-06, %v805_v52  ;;  %vm870_vm15 = vcmp.eq.f32.partialorder %v2044_v23, inf }
 0x129   : > { %v857_v15 = vsel %vm856_vm11, %v2025_v11, %v855_v1  ;;  %v1059_v54 = vpop.eup %1058  ;;  %v873_v11 = vand.u32 2147483648, %v2044_v23  ;;  %vm872_vm0 = vcmp.eq.f32.partialorder %v2044_v23, 0.0  ;;  %vm863_vm1 = vcmp.eq.f32.partialorder %v2055_v14, inf }
 0x12a   : > { %v860_v3 = vsel %vm858_vm12, %v859_v30, %v857_v15  ;;  %v850_v18 = vsel %vm849_vm13, %v2027_v10, %v848_v8  ;;  %v869_v34 = vmul.f32 %v1059_v54, %v2044_v23  ;;  %1068 = vrsqrt.f32 %v817_v33 }
 0x12b   : > { %909 = vst.msk [vmem:[%s2059_s27 + $0x28] sm:$0xff] %vm903_vm2, %v860_v3  ;;  %v853_v21 = vsel %vm851_vm14, %v852_v25, %v850_v18  ;;  %v1061_v38 = vpop.eup %1060  ;;  %v866_v0 = vand.u32 2147483648, %v2055_v14  ;;  %vm865_vm3 = vcmp.eq.f32.partialorder %v2055_v14, 0.0  ;;  %vm884_vm4 = vcmp.eq.f32.partialorder %v2063_v6, inf }
 0x12c   : > { %908 = vst.msk [vmem:[%s2059_s27 + $0x20] sm:$0xff] %vm903_vm2, %v853_v21  ;;  %v871_v32 = vsel %vm870_vm15, %v2044_v23, %v869_v34  ;;  %v862_v53 = vmul.f32 %v1061_v38, %v2055_v14  ;;  %v887_v46 = vand.u32 2147483648, %v2063_v6  ;;  %vm886_vm5 = vcmp.eq.f32.partialorder %v2063_v6, 0.0 }
 0x12d   : > { %v1063_v10 = vpop.eup %1062  ;;  %v874_v51 = vsel %vm872_vm0, %v873_v11, %v871_v32  ;;  %vm877_vm6 = vcmp.eq.f32.partialorder %v815_v12, inf  ;;  %v880_v61 = vand.u32 2147483648, %v815_v12  ;;  %vm879_vm7 = vcmp.eq.f32.partialorder %v815_v12, 0.0 }
 0x12e   : > { %911 = vst.msk [vmem:[%s2059_s27 + $0x38] sm:$0xff] %vm903_vm2, %v874_v51  ;;  %v883_v2 = vmul.f32 %v1063_v10, %v2063_v6  ;;  %v864_v40 = vsel %vm863_vm1, %v2055_v14, %v862_v53  ;;  %vm898_vm8 = vcmp.eq.f32.partialorder %v818_v62, inf  ;;  %v901_v55 = vand.u32 2147483648, %v818_v62 }
 0x12f   : > { %v867_v43 = vsel %vm865_vm3, %v866_v0, %v864_v40  ;;  %vm900_vm9 = vcmp.eq.f32.partialorder %v818_v62, 0.0  ;;  %vm891_vm10 = vcmp.eq.f32.partialorder %v817_v33, inf  ;;  %vm893_vm11 = vcmp.eq.f32.partialorder %v817_v33, 0.0 }
 0x130   : > { %v885_v23 = vsel %vm884_vm4, %v2063_v6, %v883_v2  ;;  %910 = vst.msk [vmem:[%s2059_s27 + $0x30] sm:$0xff] %vm903_vm2, %v867_v43  ;;  %v894_v6 = vand.u32 2147483648, %v817_v33 }
 0x131   : > { %v888_v39 = vsel %vm886_vm5, %v887_v46, %v885_v23 }
 0x132   : > { %v1065_v49 = vpop.eup %1064  ;;  %913 = vst.msk [vmem:[%s2059_s27 + $0x48] sm:$0xff] %vm903_vm2, %v888_v39 }
 0x133   : > { %v876_v29 = vmul.f32 %v1065_v49, %v815_v12 }
 0x134   : > { %v1067_v56 = vpop.eup %1066 }
 0x135   : > { %v878_v19 = vsel %vm877_vm6, %v815_v12, %v876_v29  ;;  %v897_v7 = vmul.f32 %v1067_v56, %v818_v62 }
 0x136   : > { %v881_v42 = vsel %vm879_vm7, %v880_v61, %v878_v19 }
 0x137   : > { %912 = vst.msk [vmem:[%s2059_s27 + $0x40] sm:$0xff] %vm903_vm2, %v881_v42  ;;  %v1069_v50 = vpop.eup %1068  ;;  %v899_v14 = vsel %vm898_vm8, %v818_v62, %v897_v7 }
 0x138   : > { %v902_v58 = vsel %vm900_vm9, %v901_v55, %v899_v14  ;;  %v890_v28 = vmul.f32 %v1069_v50, %v817_v33 }
 0x139   : > { %915 = vst.msk [vmem:[%s2059_s27 + $0x58] sm:$0xff] %vm903_vm2, %v902_v58 }
 0x13a   : > { %v892_v26 = vsel %vm891_vm10, %v817_v33, %v890_v28 }
 0x13b   : > { %v895_v9 = vsel %vm893_vm11, %v894_v6, %v892_v26 }
 0x13c   : > { %914 = vst.msk [vmem:[%s2059_s27 + $0x50] sm:$0xff] %vm903_vm2, %v895_v9 }
 0x13d   : > { %1083 = shalt.err (!%p1080_p3)
}
 0x13e   : > { %s1084_s14 = scalar_lea.hbm %s2132_s3, 1536  ;;  %s1088_s20 = scalar_lea.hbm %s2181_s1, 3072 }
 0x13f   : > { %p1085_p4 = scmp.ne.s32.totalorder %s2132_s3, %s1084_s14  ;;  %p1089_p9 = scmp.lt.s32.totalorder %s2132_s3, %s2181_s1 }
 0x140   : > { %p1090_p10 = scmp.lt.s32.totalorder %s1088_s20, %s1084_s14 }
 0x141   : > { %p1086_p7 = pnand %p1085_p4, %p1185_p5 }
 0x142   : > { %p1091_p11 = por %p1090_p10, %p1089_p9 }
 0x143   : > { %p1087_p8 = pneg %p1086_p7 }
 0x145   : > { %p1092_p12 = pnand %p1091_p11, %p1087_p8 }
 0x147   : > { %1095 = shalt.err (!%p1092_p12)
}
 0x148   : > { %s1135_s23 = smov 128   ;;  %s1136_s24 = smov 8  }
 0x149   : > { %1003 = dma.vmem_to_hbm [thread:$0]  (%p1185_p5), %s2134_s29, 1536, %s2132_s3, %s2140_s4, %s1135_s23, %s1135_s23, %s1136_s24  }
 0x14a PF: > { %p1009_p13 = scmp.ge.s32.totalorder %s1130_s9, 2  ;;  %s945_s25 = sand.u32 1, %s1118_s6  }
 0x14b   : > { %s946_s26 = scalar_lea.sflag [#allocation3], %s945_s25 }
 0x14c   : > { %p1006_p0 = pnand %p1009_p13, %p1189_p6 }
 0x14e   : > { %p1007_p1 = pneg %p1006_p0 }
 0x150   : > { %1113 = dma.done.wait (%p1007_p1), %s946_s26, 1536  }
 0x151   : > { %1115 = vsyncadd (%p1007_p1), %s946_s26, 4294965760  ;;  %p11_p2 = scmp.ge.s32.totalorder %s1172_s12, 4   ;;  %s2273_s6 = smov %s1122_s7 }
 0x152   : > { %s2274_s7 = smov %s1126_s8  ;;  %s2275_s8 = smov %s1183_s15 }
 0x153   : > { %s2276_s9 = smov %s1172_s12  ;;  %13 = sbr.rel (!%p11_p2) target bundleno = 3 (0x3), region = 59 }
 0x158   :  { %951 = vsyncpa [#allocation3], 1 }
 0x159   :  { %953 = vsyncpa [#allocation3 + $0x1], 1 }

</bundles_post_ra>
